<compile_context>
chip_gen: v7x
topology: tpu7x:2x2x1
jax: 0.10.0
libtpu: 0.0.40
codegen_flags: <defaults>
</compile_context>

<pallas_src>
import jax
import jax.numpy as jnp
from jax.experimental import pallas as pl
from jax.experimental.pallas import tpu as pltpu

N_INPUT = 1
N_OUTPUT = 3
N_NEURONS = 32
N_LAYERS = 3            # fci + (N_LAYERS-1) hidden blocks + fco
OUT_PAD = 128           # lane-dense padded output width
BLOCK_B = 256           # batch rows per grid step
BATCH = 500             # demo batch (non-multiple of BLOCK_B to exercise padding)


def pinn_kernel(t_ref, wb_in_ref, w_h_ref, b_h_ref, wbc_out_ref, out_ref):
    t = t_ref[...]                                            # (BLOCK_B, 1)

    # fci: Linear(1, H) + tanh.  K == 1 -> skip the MXU, do a VPU broadcast
    # outer product instead of a zero-padded systolic pass.
    w_in = wb_in_ref[0:1, :]                                  # (1, H)
    b_in = wb_in_ref[1:2, :]                                  # (1, H)
    h = jnp.tanh(t * w_in + b_in)                             # (BLOCK_B, H)

    # fch: (N_LAYERS-1) x [Linear(H, H) + tanh]; M = BLOCK_B rows per MXU pass.
    for l in range(N_LAYERS - 1):
        h = jnp.tanh(
            jnp.dot(h, w_h_ref[l], preferred_element_type=jnp.float32)
            + b_h_ref[l])                                     # (BLOCK_B, H)

    # fco: Linear(H, 3) padded to OUT_PAD lanes -> full-width (unmasked) stores.
    w_out = wbc_out_ref[0:N_NEURONS, :]                       # (H, OUT_PAD)
    b_out = wbc_out_ref[N_NEURONS:N_NEURONS + 1, :]           # (1, OUT_PAD)
    xy = jnp.dot(h, w_out, preferred_element_type=jnp.float32) + b_out

    # Fused boundary constants: c0=x0, c1=xN-x0, c2=v0-(xN-x0), c3=vN-v0.
    c0 = wbc_out_ref[N_NEURONS + 1:N_NEURONS + 2, :]
    c1 = wbc_out_ref[N_NEURONS + 2:N_NEURONS + 3, :]
    c2 = wbc_out_ref[N_NEURONS + 3:N_NEURONS + 4, :]
    c3 = wbc_out_ref[N_NEURONS + 4:N_NEURONS + 5, :]

    # psi = t^2 (1-t)^2 = u^2,  phi = 2t^3 - 3t^2 + t = u*(1 - 2t), u = t(1-t)
    u = t * (1.0 - t)
    psi_t = u * u
    phi_t = u * (1.0 - 2.0 * t)

    # R(t) + psi*xy + phi*(V(t) - R_dot(t))
    out_ref[...] = c0 + t * c1 + psi_t * xy + phi_t * (c2 + t * c3)


def pack_params(params):
    (w_in, b_in, w_h, b_h, w_out, b_out, x0, xN, v0, vN) = params
    wb_in = jnp.concatenate([w_in, b_in], axis=0)                    # (2, H)

    # One lane-dense slab: rows [0..H-1]=w_out, [H]=b_out, [H+1..H+4]=c0..c3.
    wbc = jnp.zeros((N_NEURONS + 5, OUT_PAD), jnp.float32)
    wbc = wbc.at[:N_NEURONS, :N_OUTPUT].set(w_out)
    wbc = wbc.at[N_NEURONS, :N_OUTPUT].set(b_out[0])
    wbc = wbc.at[N_NEURONS + 1, :N_OUTPUT].set(x0[0])
    wbc = wbc.at[N_NEURONS + 2, :N_OUTPUT].set((xN - x0)[0])
    wbc = wbc.at[N_NEURONS + 3, :N_OUTPUT].set((v0 - (xN - x0))[0])
    wbc = wbc.at[N_NEURONS + 4, :N_OUTPUT].set((vN - v0)[0])
    return wb_in, w_h, b_h, wbc


def pinn_forward(t, packed, block_b=BLOCK_B):
    wb_in, w_h, b_h, wbc = packed
    b = t.shape[0]
    b_pad = ((b + block_b - 1) // block_b) * block_b
    if b_pad != b:
        t = jnp.pad(t, ((0, b_pad - b), (0, 0)))

    out_padded = pl.pallas_call(
        pinn_kernel,
        out_shape=jax.ShapeDtypeStruct((b_pad, OUT_PAD), jnp.float32),
        grid=(b_pad // block_b,),
        in_specs=[
            pl.BlockSpec((block_b, N_INPUT), lambda i: (i, 0)),
            pl.BlockSpec((2, N_NEURONS), lambda i: (0, 0)),
            pl.BlockSpec((N_LAYERS - 1, N_NEURONS, N_NEURONS),
                         lambda i: (0, 0, 0)),
            pl.BlockSpec((N_LAYERS - 1, 1, N_NEURONS), lambda i: (0, 0, 0)),
            pl.BlockSpec((N_NEURONS + 5, OUT_PAD), lambda i: (0, 0)),
        ],
        out_specs=pl.BlockSpec((block_b, OUT_PAD), lambda i: (i, 0)),
        compiler_params=pltpu.CompilerParams(
            dimension_semantics=("parallel",)),
    )(t, wb_in, w_h, b_h, wbc)
    return out_padded[:b, :N_OUTPUT]


def make_params(key):
    ks = jax.random.split(key, 6)
    scale = 0.1
    # weights stored as (in, out) == transpose of PyTorch's (out, in)
    w_in = scale * jax.random.normal(ks[0], (N_INPUT, N_NEURONS), jnp.float32)
    b_in = scale * jax.random.normal(ks[1], (1, N_NEURONS), jnp.float32)
    w_h = scale * jax.random.normal(ks[2], (N_LAYERS - 1, N_NEURONS, N_NEURONS),
                                    jnp.float32)
    b_h = scale * jax.random.normal(ks[3], (N_LAYERS - 1, 1, N_NEURONS),
                                    jnp.float32)
    w_out = scale * jax.random.normal(ks[4], (N_NEURONS, N_OUTPUT), jnp.float32)
    b_out = scale * jax.random.normal(ks[5], (1, N_OUTPUT), jnp.float32)

    x0 = jnp.array([[-1.0, -1.0, 0.0]], jnp.float32)
    xN = jnp.array([[1.0, 1.0, 0.0]], jnp.float32)
    v0 = jnp.array([[1.0, 1.0, 0.0]], jnp.float32)
    vN = jnp.array([[1.0, 1.0, 0.0]], jnp.float32)
    return (w_in, b_in, w_h, b_h, w_out, b_out, x0, xN, v0, vN)


def pinn_reference(t, params):
    (w_in, b_in, w_h, b_h, w_out, b_out, x0, xN, v0, vN) = params
    h = jnp.tanh(t @ w_in + b_in)
    for l in range(N_LAYERS - 1):
        h = jnp.tanh(h @ w_h[l] + b_h[l])
    xy = h @ w_out + b_out
    R_t = t * (xN - x0) + x0
    R_dot = xN - x0
    V_t = t * (vN - v0) + v0
    phi_t = 2.0 * t ** 3 - 3.0 * t ** 2 + t
    psi_t = t ** 2 * (1.0 - t) ** 2
    return R_t + psi_t * xy + phi_t * (V_t - R_dot)


if __name__ == "__main__":
    key = jax.random.PRNGKey(0)
    k_params, k_t = jax.random.split(key)
    params = make_params(k_params)
    t = jax.random.uniform(k_t, (BATCH, N_INPUT), jnp.float32)   # t in [0, 1)

    packed = pack_params(params)
    out = pinn_forward(t, packed)
    out = jax.block_until_ready(out)

    ref = pinn_reference(t, params)
    assert out.shape == (BATCH, N_OUTPUT)
    assert jnp.allclose(out, ref, atol=1e-5, rtol=1e-5)
    print("KERNEL_OK")
</pallas_src>

<mosaic_0001>
module attributes {stable_mosaic.version = 11 : i64} {
  func.func @pinn_kernel(%arg0: i32, %arg1: memref<256x1xf32, #tpu.memory_space<vmem>>, %arg2: memref<2x32xf32, #tpu.memory_space<vmem>>, %arg3: memref<2x32x32xf32, #tpu.memory_space<vmem>>, %arg4: memref<2x1x32xf32, #tpu.memory_space<vmem>>, %arg5: memref<37x128xf32, #tpu.memory_space<vmem>>, %arg6: memref<256x128xf32, #tpu.memory_space<vmem>>) attributes {dimension_semantics = [#tpu.dimension_semantics<parallel>], iteration_bounds = array<i64: 2>, scalar_prefetch = 0 : i64, scratch_operands = 0 : i64, tpu.core_type = #tpu.core_type<tc>, window_params = [{transform_indices = @transform_0, window_bounds = array<i64: 256, 1>}, {pipeline_mode = #tpu.pipeline_mode<synchronous>, transform_indices = @transform_1, window_bounds = array<i64: 2, 32>}, {pipeline_mode = #tpu.pipeline_mode<synchronous>, transform_indices = @transform_2, window_bounds = array<i64: 2, 32, 32>}, {pipeline_mode = #tpu.pipeline_mode<synchronous>, transform_indices = @transform_3, window_bounds = array<i64: 2, 1, 32>}, {pipeline_mode = #tpu.pipeline_mode<synchronous>, transform_indices = @transform_4, window_bounds = array<i64: 37, 128>}, {transform_indices = @transform_5, window_bounds = array<i64: 256, 128>}]} {
    %c0 = arith.constant 0 : index
    %c0_0 = arith.constant 0 : index
    %0 = vector.load %arg1[%c0, %c0_0] : memref<256x1xf32, #tpu.memory_space<vmem>>, vector<256x1xf32>
    %c0_1 = arith.constant 0 : index
    %c0_2 = arith.constant 0 : index
    %1 = vector.load %arg2[%c0_1, %c0_2] : memref<2x32xf32, #tpu.memory_space<vmem>>, vector<1x32xf32>
    %c1 = arith.constant 1 : index
    %c0_3 = arith.constant 0 : index
    %2 = vector.load %arg2[%c1, %c0_3] : memref<2x32xf32, #tpu.memory_space<vmem>>, vector<1x32xf32>
    %3 = vector.broadcast %0 : vector<256x1xf32> to vector<256x32xf32>
    %4 = vector.broadcast %1 : vector<1x32xf32> to vector<256x32xf32>
    %5 = arith.mulf %3, %4 : vector<256x32xf32>
    %6 = vector.broadcast %2 : vector<1x32xf32> to vector<256x32xf32>
    %7 = arith.addf %5, %6 : vector<256x32xf32>
    %8 = math.tanh %7 : vector<256x32xf32>
    %c0_4 = arith.constant 0 : index
    %c0_5 = arith.constant 0 : index
    %c0_6 = arith.constant 0 : index
    %9 = vector.load %arg3[%c0_4, %c0_5, %c0_6] : memref<2x32x32xf32, #tpu.memory_space<vmem>>, vector<1x32x32xf32>
    %10 = vector.shape_cast %9 : vector<1x32x32xf32> to vector<32x32xf32>
    %cst = arith.constant dense<0.000000e+00> : vector<256x32xf32>
    %11 = tpu.matmul %8, %10, %cst {dimension_numbers = #tpu.dot_dimension_numbers<[1], [0], [0], [1], [0, 0, 1, 1], [], []>} : vector<256x32xf32>, vector<32x32xf32>, vector<256x32xf32> -> vector<256x32xf32>
    %c0_7 = arith.constant 0 : index
    %c0_8 = arith.constant 0 : index
    %c0_9 = arith.constant 0 : index
    %12 = vector.load %arg4[%c0_7, %c0_8, %c0_9] : memref<2x1x32xf32, #tpu.memory_space<vmem>>, vector<1x1x32xf32>
    %13 = vector.shape_cast %12 : vector<1x1x32xf32> to vector<1x32xf32>
    %14 = vector.broadcast %13 : vector<1x32xf32> to vector<256x32xf32>
    %15 = arith.addf %11, %14 : vector<256x32xf32>
    %16 = math.tanh %15 : vector<256x32xf32>
    %c1_10 = arith.constant 1 : index
    %c0_11 = arith.constant 0 : index
    %c0_12 = arith.constant 0 : index
    %17 = vector.load %arg3[%c1_10, %c0_11, %c0_12] : memref<2x32x32xf32, #tpu.memory_space<vmem>>, vector<1x32x32xf32>
    %18 = vector.shape_cast %17 : vector<1x32x32xf32> to vector<32x32xf32>
    %cst_13 = arith.constant dense<0.000000e+00> : vector<256x32xf32>
    %19 = tpu.matmul %16, %18, %cst_13 {dimension_numbers = #tpu.dot_dimension_numbers<[1], [0], [0], [1], [0, 0, 1, 1], [], []>} : vector<256x32xf32>, vector<32x32xf32>, vector<256x32xf32> -> vector<256x32xf32>
    %c1_14 = arith.constant 1 : index
    %c0_15 = arith.constant 0 : index
    %c0_16 = arith.constant 0 : index
    %20 = vector.load %arg4[%c1_14, %c0_15, %c0_16] : memref<2x1x32xf32, #tpu.memory_space<vmem>>, vector<1x1x32xf32>
    %21 = vector.shape_cast %20 : vector<1x1x32xf32> to vector<1x32xf32>
    %22 = vector.broadcast %21 : vector<1x32xf32> to vector<256x32xf32>
    %23 = arith.addf %19, %22 : vector<256x32xf32>
    %24 = math.tanh %23 : vector<256x32xf32>
    %c0_17 = arith.constant 0 : index
    %c0_18 = arith.constant 0 : index
    %25 = vector.load %arg5[%c0_17, %c0_18] : memref<37x128xf32, #tpu.memory_space<vmem>>, vector<32x128xf32>
    %c32 = arith.constant 32 : index
    %c0_19 = arith.constant 0 : index
    %26 = vector.load %arg5[%c32, %c0_19] : memref<37x128xf32, #tpu.memory_space<vmem>>, vector<1x128xf32>
    %cst_20 = arith.constant dense<0.000000e+00> : vector<256x128xf32>
    %27 = tpu.matmul %24, %25, %cst_20 {dimension_numbers = #tpu.dot_dimension_numbers<[1], [0], [0], [1], [0, 0, 1, 1], [], []>} : vector<256x32xf32>, vector<32x128xf32>, vector<256x128xf32> -> vector<256x128xf32>
    %28 = vector.broadcast %26 : vector<1x128xf32> to vector<256x128xf32>
    %29 = arith.addf %27, %28 : vector<256x128xf32>
    %c33 = arith.constant 33 : index
    %c0_21 = arith.constant 0 : index
    %30 = vector.load %arg5[%c33, %c0_21] : memref<37x128xf32, #tpu.memory_space<vmem>>, vector<1x128xf32>
    %c34 = arith.constant 34 : index
    %c0_22 = arith.constant 0 : index
    %31 = vector.load %arg5[%c34, %c0_22] : memref<37x128xf32, #tpu.memory_space<vmem>>, vector<1x128xf32>
    %c35 = arith.constant 35 : index
    %c0_23 = arith.constant 0 : index
    %32 = vector.load %arg5[%c35, %c0_23] : memref<37x128xf32, #tpu.memory_space<vmem>>, vector<1x128xf32>
    %c36 = arith.constant 36 : index
    %c0_24 = arith.constant 0 : index
    %33 = vector.load %arg5[%c36, %c0_24] : memref<37x128xf32, #tpu.memory_space<vmem>>, vector<1x128xf32>
    %cst_25 = arith.constant 1.000000e+00 : f32
    %34 = vector.broadcast %cst_25 : f32 to vector<256x1xf32>
    %35 = arith.subf %34, %0 : vector<256x1xf32>
    %36 = arith.mulf %0, %35 : vector<256x1xf32>
    %37 = arith.mulf %36, %36 : vector<256x1xf32>
    %cst_26 = arith.constant 2.000000e+00 : f32
    %38 = vector.broadcast %cst_26 : f32 to vector<256x1xf32>
    %39 = arith.mulf %38, %0 : vector<256x1xf32>
    %cst_27 = arith.constant 1.000000e+00 : f32
    %40 = vector.broadcast %cst_27 : f32 to vector<256x1xf32>
    %41 = arith.subf %40, %39 : vector<256x1xf32>
    %42 = arith.mulf %36, %41 : vector<256x1xf32>
    %43 = vector.broadcast %0 : vector<256x1xf32> to vector<256x128xf32>
    %44 = vector.broadcast %31 : vector<1x128xf32> to vector<256x128xf32>
    %45 = arith.mulf %43, %44 : vector<256x128xf32>
    %46 = vector.broadcast %30 : vector<1x128xf32> to vector<256x128xf32>
    %47 = arith.addf %46, %45 : vector<256x128xf32>
    %48 = vector.broadcast %37 : vector<256x1xf32> to vector<256x128xf32>
    %49 = arith.mulf %48, %29 : vector<256x128xf32>
    %50 = arith.addf %47, %49 : vector<256x128xf32>
    %51 = vector.broadcast %0 : vector<256x1xf32> to vector<256x128xf32>
    %52 = vector.broadcast %33 : vector<1x128xf32> to vector<256x128xf32>
    %53 = arith.mulf %51, %52 : vector<256x128xf32>
    %54 = vector.broadcast %32 : vector<1x128xf32> to vector<256x128xf32>
    %55 = arith.addf %54, %53 : vector<256x128xf32>
    %56 = vector.broadcast %42 : vector<256x1xf32> to vector<256x128xf32>
    %57 = arith.mulf %56, %55 : vector<256x128xf32>
    %58 = arith.addf %50, %57 : vector<256x128xf32>
    %c0_28 = arith.constant 0 : index
    %c0_29 = arith.constant 0 : index
    %59 = vector.load %arg6[%c0_28, %c0_29] : memref<256x128xf32, #tpu.memory_space<vmem>>, vector<256x128xf32>
    tpu.vector_store %arg6[%c0_28, %c0_29], %58 {strides = array<i32>} : memref<256x128xf32, #tpu.memory_space<vmem>>, vector<256x128xf32>,
    return
  }
  func.func @transform_0(%arg0: i32) -> (i32, i32) {
    %c0_i32 = arith.constant 0 : i32
    %c0_i32_0 = arith.constant 0 : i32
    return %arg0, %c0_i32 : i32, i32
  }
  func.func @transform_1(%arg0: i32) -> (i32, i32) {
    %c0_i32 = arith.constant 0 : i32
    %c0_i32_0 = arith.constant 0 : i32
    %c0_i32_1 = arith.constant 0 : i32
    return %c0_i32, %c0_i32_0 : i32, i32
  }
  func.func @transform_2(%arg0: i32) -> (i32, i32, i32) {
    %c0_i32 = arith.constant 0 : i32
    %c0_i32_0 = arith.constant 0 : i32
    %c0_i32_1 = arith.constant 0 : i32
    %c0_i32_2 = arith.constant 0 : i32
    return %c0_i32, %c0_i32_0, %c0_i32_1 : i32, i32, i32
  }
  func.func @transform_3(%arg0: i32) -> (i32, i32, i32) {
    %c0_i32 = arith.constant 0 : i32
    %c0_i32_0 = arith.constant 0 : i32
    %c0_i32_1 = arith.constant 0 : i32
    %c0_i32_2 = arith.constant 0 : i32
    return %c0_i32, %c0_i32_0, %c0_i32_1 : i32, i32, i32
  }
  func.func @transform_4(%arg0: i32) -> (i32, i32) {
    %c0_i32 = arith.constant 0 : i32
    %c0_i32_0 = arith.constant 0 : i32
    %c0_i32_1 = arith.constant 0 : i32
    return %c0_i32, %c0_i32_0 : i32, i32
  }
  func.func @transform_5(%arg0: i32) -> (i32, i32) {
    %c0_i32 = arith.constant 0 : i32
    %c0_i32_0 = arith.constant 0 : i32
    return %arg0, %c0_i32 : i32, i32
  }
}

</mosaic_0001>

<bundles_post_ra>
// kernel: tpu_custom_call.1
= control target key start
LH: loop header
LB: loop body
LE: loop exit
PB: predicated region body
PF: predicated region fallthrough
CT: control target
= control target key end

     0   :  { %10 = vsyncpa [#allocation3], 0  ;;  %s4701_s0 = inlined_call_operand.vmem [shape: f32[512,1], index: 0, kind: input, shape index: {}]   ;;  %s4702_s1 = inlined_call_operand.vmem [shape: f32[2,32], index: 1, kind: input, shape index: {}]   ;;  %s4703_s2 = inlined_call_operand.vmem [shape: f32[2,32,32], index: 2, kind: input, shape index: {}]   ;;  %s4704_s3 = inlined_call_operand.vmem [shape: f32[2,1,32], index: 3, kind: input, shape index: {}]   ;;  %s4705_s4 = inlined_call_operand.vmem [shape: f32[37,128], index: 4, kind: input, shape index: {}]   ;;  %s4706_s5 = inlined_call_operand.hbm [shape: f32[512,128], index: 5, kind: output, shape index: {}]  }
   0x1   :  { %12 = vsyncpa [#allocation3 + $0x1], 0  ;;  %s3242_s18 = smov 0   ;;  %s3244_s19 = smov 0  }
   0x2   :  { %s3246_s20 = smov 0   ;;  %s3248_s21 = smov 0  }
   0x3 LB: > { %s3263_s22 = sadd.s32 4294967295, %s3206_s21   ;;  %s2481_s23 = sadd.s32 4294967294, %s3206_s21   ;;  %s3206_s21 = sphi %s3248_s21, %s4850_s21   ;;  %s3202_s20 = sphi %s3246_s20, %s4849_s20   ;;  %s3198_s19 = sphi %s3244_s19, %s4848_s19   ;;  %s3194_s18 = sphi %s3242_s18, %s4847_s18  }
   0x4   : > { %s3267_s24 = sadd.s32 1, %s3206_s21   ;;  %s135_s25 = sadd.s32 1, %s3202_s20 }
   0x5   : > { %s132_s26 = ssub.s32 %s3206_s21, %s3267_s24  ;;  %p145_p0 = scmp.ne.s32.totalorder %s3202_s20, %s3198_s19 }
   0x6   : > { %p133_p1 = scmp.eq.s32.totalorder %s132_s26, 0  ;;  %p146_p2 = scmp.eq.s32.totalorder %s3263_s22, 1 }
   0x7   : > { %p151_p3 = scmp.ne.s32.totalorder %s3198_s19, %s3194_s18  ;;  %p152_p4 = scmp.eq.s32.totalorder %s2481_s23, 1 }
   0x8   : > { %s3278_s27 = scalar_select %p133_p1, %s3202_s20, %s135_s25  }
   0x9   : > { %p3280_p5 = por %p146_p2, %p145_p0  ;;  %p3284_p6 = por %p152_p4, %p151_p3 }
   0xa   : > { %p2484_p7 = scmp.ge.s32.totalorder %s3206_s21, 1  ;;  %p191_p8 = scmp.lt.s32.totalorder %s3206_s21, 3 }
   0xc   : > { %p192_p9 = pnand %p2484_p7, %p191_p8 }
   0xe   : > { %195 = sbr.rel (%p192_p9) target bundleno = 925 (0x39d), region = 40 }
  0x15   : > { %s2486_s30 = sshll.u32 %s3263_s22, 5  ;;  %v3208_v0 = vmov 0   ;;  %vm535_vm0 = vcmask 261120   ;;  %s216_s26 = sand.u32 1, %s3198_s19  }
  0x16   : > { %2951 = vset.pattern.permute.xlu1 %v3208_v0  ;;  %2950 = vset.pattern.permute.xlu0 %v3208_v0  ;;  %p220_p10 = scmp.lt.s32.totalorder %s2486_s30, 63  ;;  %s2603_s7 = sshll.u32 %s3263_s22, 12 }
  0x17   : > { %s4652_s11 = scalar_lea.hbm %s4706_s5, %s2603_s7  ;;  %s4660_s22 = scalar_lea.sflag [#allocation3], %s216_s26 }
  0x18   : > { %s4852_s30 = smov (!%p220_p10, %s2486_s30), 63  ;;  %s3209_s13 = smov [#allocation2]  }
  0x19   : > { %s2487_s6 = sshll.u32 %s4852_s30, 3  ;;  %s2485_s30 = sshll.u32 %s216_s26, 8 }
  0x1a   : > { %s3294_s9 = scalar_lea.vmem %s4701_s0, %s2487_s6  ;;  %s4349_s6 = scalar_lea.vmem [#allocation2], %s2485_s30 }
  0x1b   : > { %v3297_v1 = vld [vmem:[%s3294_s9 + $0x10] sm:$0xff]  ;;  %v3300_v2 = vld [vmem:[%s3294_s9] sm:$0xff]  ;;  %v3305_v3 = vld [vmem:[%s3294_s9 + $0x18] sm:$0xff]  ;;  %s2419_s8 = sshll.u32 %s4349_s6, 4  ;;  %s3148_s14 = sshll.u32 %s3209_s13, 4  ;;  %s4654_s8 = int_to_ptr.vmem [resolvable:$true] %s2419_s8  ;;  %s3149_s14 = int_to_ptr.vmem [resolvable:$false] %s3148_s14 }
  0x1c   : > { %272 = vperm.xlu1 %2951, %v3297_v1   ;;  %262 = vperm.xlu0 %2950, %v3300_v2   ;;  %v227_v4 = vld [vmem:[%s3294_s9 + $0x8] sm:$0xff]  ;;  %v3313_v6 = vld [vmem:[%s3294_s9 + $0x20] sm:$0xff]  ;;  %v3318_v7 = vld [vmem:[%s3294_s9 + $0x38] sm:$0xff]  ;;  %v1591_v9 = vsub.f32 1.0, %v3297_v1  ;;  %v1589_v10 = vsub.f32 1.0, %v3300_v2  ;;  %v1592_v11 = vsub.f32 1.0, %v3305_v3  ;;  %p3151_p0 = scmp.lt.s32.totalorder %s4654_s8, %s3149_s14 }
  0x1d   : > { %v3310_v5 = vld [vmem:[%s3294_s9 + $0x28] sm:$0xff]  ;;  %v3321_v8 = vld [vmem:[%s3294_s9 + $0x30] sm:$0xff]  ;;  %v1590_v12 = vsub.f32 1.0, %v227_v4  ;;  %v1593_v15 = vsub.f32 1.0, %v3313_v6  ;;  %v1596_v16 = vsub.f32 1.0, %v3318_v7  ;;  %v3336_v18 = vld [vmem:[%s3294_s9 + $0x40] sm:$0xff] }
  0x1e   : > { %v1594_v13 = vsub.f32 1.0, %v3310_v5  ;;  %v3330_v14 = vld [vmem:[%s3294_s9 + $0x48] sm:$0xff]  ;;  %v1595_v17 = vsub.f32 1.0, %v3321_v8  ;;  %v3339_v19 = vld [vmem:[%s3294_s9 + $0x58] sm:$0xff]  ;;  %v3342_v20 = vld [vmem:[%s3294_s9 + $0x50] sm:$0xff]  ;;  %v1597_v22 = vsub.f32 1.0, %v3336_v18  ;;  %v3380_v39 = vmul.f32 %v1589_v10, %v3300_v2 }
  0x1f   : > { %v1598_v21 = vsub.f32 1.0, %v3330_v14  ;;  %v1600_v23 = vsub.f32 1.0, %v3339_v19  ;;  %v1599_v24 = vsub.f32 1.0, %v3342_v20  ;;  %v3349_v25 = vld [vmem:[%s3294_s9 + $0x68] sm:$0xff]  ;;  %v3352_v26 = vld [vmem:[%s3294_s9 + $0x60] sm:$0xff]  ;;  %v3357_v29 = vld [vmem:[%s3294_s9 + $0x78] sm:$0xff]  ;;  %v3394_v46 = vmul.f32 %v1590_v12, %v227_v4 }
  0x20   : > { %277 = vperm.xlu1 %2951, %v3305_v3   ;;  %267 = vperm.xlu0 %2950, %v227_v4   ;;  %v1602_v27 = vsub.f32 1.0, %v3349_v25  ;;  %v1601_v28 = vsub.f32 1.0, %v3352_v26  ;;  %v3360_v30 = vld [vmem:[%s3294_s9 + $0x70] sm:$0xff]  ;;  %v3363_v31 = vld [vmem:[%s3294_s9 + $0x88] sm:$0xff]  ;;  %v1686_v32 = vmul.f32 2.0, %v227_v4  ;;  %v1604_v33 = vsub.f32 1.0, %v3357_v29 }
  0x21   : > { %v1603_v34 = vsub.f32 1.0, %v3360_v30  ;;  %v1606_v35 = vsub.f32 1.0, %v3363_v31  ;;  %v3371_v36 = vld [vmem:[%s3294_s9 + $0x80] sm:$0xff]  ;;  %v3374_v37 = vld [vmem:[%s3294_s9 + $0x98] sm:$0xff]  ;;  %v3377_v38 = vld [vmem:[%s3294_s9 + $0x90] sm:$0xff]  ;;  %v3406_v52 = vmul.f32 %v1592_v11, %v3305_v3  ;;  %v3414_v56 = vmul.f32 %v1591_v9, %v3297_v1  ;;  %s3144_s12 = scalar_lea.vmem %s4654_s8, 4096 }
  0x22   : > { %v1605_v40 = vsub.f32 1.0, %v3371_v36  ;;  %v1608_v41 = vsub.f32 1.0, %v3374_v37  ;;  %v1607_v42 = vsub.f32 1.0, %v3377_v38  ;;  %v3386_v43 = vld [vmem:[%s3294_s9 + $0xa8] sm:$0xff]  ;;  %v3389_v44 = vld [vmem:[%s3294_s9 + $0xa0] sm:$0xff]  ;;  %v3392_v45 = vld [vmem:[%s3294_s9 + $0xb8] sm:$0xff]  ;;  %v3420_v59 = vmul.f32 %v1594_v13, %v3310_v5  ;;  %p3145_p11 = scmp.ne.s32.totalorder %s4654_s8, %s3144_s12 }
  0x23   : > { %v1610_v47 = vsub.f32 1.0, %v3386_v43  ;;  %v1609_v48 = vsub.f32 1.0, %v3389_v44  ;;  %v1612_v49 = vsub.f32 1.0, %v3392_v45  ;;  %v3400_v50 = vld [vmem:[%s3294_s9 + $0xb0] sm:$0xff]  ;;  %v3403_v51 = vld [vmem:[%s3294_s9 + $0xc8] sm:$0xff]  ;;  %v3411_v55 = vld [vmem:[%s3294_s9 + $0xc0] sm:$0xff]  ;;  %v3423_v60 = vmul.f32 %v1593_v15, %v3313_v6 }
  0x24   : > { %287 = vperm.xlu1 %2951, %v3310_v5   ;;  %282 = vperm.xlu0 %2950, %v3313_v6   ;;  %v1611_v53 = vsub.f32 1.0, %v3400_v50  ;;  %v1718_v57 = vsub.f32 1.0, %v1686_v32  ;;  %v1685_v61 = vmul.f32 2.0, %v3300_v2  ;;  %v3427_v62 = vmul.f32 %v1596_v16, %v3318_v7  ;;  %p3146_p12 = pnand %p3145_p11, %p3280_p5  ;;  %s3150_s15 = scalar_lea.vmem %s3149_s14, 8192 }
  0x25   : > { %v3430_v63 = vmul.f32 %v1595_v17, %v3321_v8  ;;  %v3433_v0 = vmul.f32 %v1598_v21, %v3330_v14  ;;  %v3436_v4 = vmul.f32 %v1597_v22, %v3336_v18  ;;  %v3439_v9 = vmul.f32 %v1600_v23, %v3339_v19  ;;  %p3152_p1 = scmp.lt.s32.totalorder %s3150_s15, %s3144_s12 }
  0x26   : > { %v3442_v10 = vmul.f32 %v1599_v24, %v3342_v20  ;;  %v3445_v2 = vmul.f32 %v1602_v27, %v3349_v25  ;;  %v3448_v11 = vmul.f32 %v1601_v28, %v3352_v26  ;;  %v3451_v12 = vmul.f32 %v1604_v33, %v3357_v29  ;;  %v524_v24 = vld [vmem:[%s4703_s2] sm:$0xff]  ;;  %v525_v27 = vld [vmem:[%s4703_s2 + $0x8] sm:$0xff]  ;;  %p3147_p13 = pneg %p3146_p12 }
  0x27   : > { %v3454_v13 = vmul.f32 %v1603_v34, %v3360_v30  ;;  %v3457_v15 = vmul.f32 %v1606_v35, %v3363_v31  ;;  %v3460_v16 = vmul.f32 %v1718_v57, %v3394_v46  ;;  %v3465_v17 = vmul.f32 %v1605_v40, %v3371_v36  ;;  %v526_v35 = vld [vmem:[%s4703_s2 + $0x10] sm:$0xff]  ;;  %v527_v40 = vld [vmem:[%s4703_s2 + $0x18] sm:$0xff]  ;;  %p3153_p2 = por %p3152_p1, %p3151_p0 }
  0x28   : > { %297 = vperm.xlu1 %2951, %v3318_v7   ;;  %292 = vperm.xlu0 %2950, %v3321_v8   ;;  %v3468_v21 = vmul.f32 %v1608_v41, %v3374_v37  ;;  %v3471_v22 = vmul.f32 %v1607_v42, %v3377_v38  ;;  %v1717_v23 = vsub.f32 1.0, %v1685_v61  ;;  %v3480_v28 = vmul.f32 %v1610_v47, %v3386_v43 }
  0x29   : > { %v3483_v32 = vmul.f32 %v1609_v48, %v3389_v44  ;;  %v3486_v33 = vmul.f32 %v1612_v49, %v3392_v45  ;;  %v1688_v34 = vmul.f32 2.0, %v3305_v3  ;;  %v1687_v42 = vmul.f32 2.0, %v3297_v1  ;;  %p3154_p3 = pnand %p3153_p2, %p3147_p13 }
  0x2a   : > { %v3496_v41 = vmul.f32 %v1717_v23, %v3380_v39  ;;  %v1690_v47 = vmul.f32 2.0, %v3310_v5  ;;  %v1689_v48 = vmul.f32 2.0, %v3313_v6  ;;  %v2880_v57 = vpack.c.bf16 %v525_v27, %v524_v24 }
  0x2b   : > { %v1720_v49 = vsub.f32 1.0, %v1688_v34  ;;  %v1692_v3 = vmul.f32 2.0, %v3318_v7  ;;  %v1691_v61 = vmul.f32 2.0, %v3321_v8  ;;  %v1719_v58 = vsub.f32 1.0, %v1687_v42 }
  0x2c   : > { %307 = vperm.xlu1 %2951, %v3330_v14   ;;  %302 = vperm.xlu0 %2950, %v3336_v18   ;;  %4739 = vst [vmem:[#allocation5_spill] sm:$0xff] %v3496_v41  ;;  %v1722_v54 = vsub.f32 1.0, %v1690_v47  ;;  %v1721_v23 = vsub.f32 1.0, %v1689_v48  ;;  %v2884_v41 = vpack.c.bf16 %v527_v40, %v526_v35  ;;  %v3506_v1 = vmul.f32 %v1611_v53, %v3400_v50 }
  0x2d   : > { %v3509_v5 = vmul.f32 %v1720_v49, %v3406_v52  ;;  %2881 = vmatprep.subr.bf16.mxu0 %v2880_v57  ;;  %v1724_v6 = vsub.f32 1.0, %v1692_v3  ;;  %v1723_v24 = vsub.f32 1.0, %v1691_v61  ;;  %2904 = vmatprep.subr.bf16.mxu1 %v2880_v57  ;;  %v3512_v7 = vmul.f32 %v1719_v58, %v3414_v56 }
  0x2e   : > { %v3515_v8 = vmul.f32 %v1722_v54, %v3420_v59  ;;  %v3518_v27 = vmul.f32 %v1721_v23, %v3423_v60  ;;  %2883 = vmatpush3.bf16.msra.mxu0 %v2880_v57  ;;  %v1694_v53 = vmul.f32 2.0, %v3330_v14  ;;  %2906 = vmatpush3.bf16.msra.mxu1 %v2880_v57  ;;  %v1693_v58 = vmul.f32 2.0, %v3336_v18 }
  0x2f   : > { %v3522_v34 = vmul.f32 %v1724_v6, %v3427_v62  ;;  %v3525_v35 = vmul.f32 %v1723_v24, %v3430_v63  ;;  %2885 = vmatprep.subr.bf16.mxu0 %v2884_v41  ;;  %v1696_v40 = vmul.f32 2.0, %v3339_v19  ;;  %2905 = vmatprep.subr.bf16.mxu1 %v2884_v41  ;;  %v1695_v14 = vmul.f32 2.0, %v3342_v20 }
  0x30   : > { %317 = vperm.xlu1 %2951, %v3339_v19   ;;  %312 = vperm.xlu0 %2950, %v3342_v20   ;;  %v1726_v54 = vsub.f32 1.0, %v1694_v53  ;;  %v1698_v42 = vmul.f32 2.0, %v3349_v25  ;;  %v1697_v47 = vmul.f32 2.0, %v3352_v26  ;;  %v1725_v48 = vsub.f32 1.0, %v1693_v58 }
  0x31   : > { %v1728_v49 = vsub.f32 1.0, %v1696_v40  ;;  %v1700_v57 = vmul.f32 2.0, %v3357_v29  ;;  %v1699_v18 = vmul.f32 2.0, %v3360_v30  ;;  %v1727_v3 = vsub.f32 1.0, %v1695_v14 }
  0x32   : > { %2887 = vmatpush3.bf16.msra.mxu0 %v2884_v41  ;;  %v3537_v19 = vmul.f32 %v1726_v54, %v3433_v0  ;;  %v1730_v61 = vsub.f32 1.0, %v1698_v42  ;;  %v1729_v23 = vsub.f32 1.0, %v1697_v47  ;;  %2907 = vmatpush3.bf16.msra.mxu1 %v2884_v41  ;;  %v3540_v20 = vmul.f32 %v1725_v48, %v3436_v4 }
  0x33   : > { %v1731_v6 = vsub.f32 1.0, %v1699_v18  ;;  %v1702_v24 = vmul.f32 2.0, %v3363_v31  ;;  %v1701_v40 = vmul.f32 2.0, %v3371_v36  ;;  %v1704_v54 = vmul.f32 2.0, %v3374_v37 }
  0x34   : > { %327 = vperm.xlu1 %2951, %v3349_v25   ;;  %322 = vperm.xlu0 %2950, %v3352_v26   ;;  %v3543_v25 = vmul.f32 %v1728_v49, %v3439_v9  ;;  %v1732_v26 = vsub.f32 1.0, %v1700_v57  ;;  %v3554_v41 = vmul.f32 %v1729_v23, %v3448_v11  ;;  %v1703_v42 = vmul.f32 2.0, %v3377_v38 }
  0x35   : > { %v3561_v58 = vmul.f32 %v1731_v6, %v3454_v13  ;;  %v1734_v14 = vsub.f32 1.0, %v1702_v24  ;;  %v1706_v47 = vmul.f32 2.0, %v3386_v43  ;;  %v1705_v48 = vmul.f32 2.0, %v3389_v44 }
  0x36   : > { %v3558_v53 = vmul.f32 %v1732_v26, %v3451_v12  ;;  %v1733_v49 = vsub.f32 1.0, %v1701_v40  ;;  %v1736_v57 = vsub.f32 1.0, %v1704_v54  ;;  %v1707_v18 = vmul.f32 2.0, %v3400_v50 }
  0x38   : > { %337 = vperm.xlu1 %2951, %v3357_v29   ;;  %332 = vperm.xlu0 %2950, %v3360_v30   ;;  %v3548_v29 = vmul.f32 %v1727_v3, %v3442_v10  ;;  %v3551_v30 = vmul.f32 %v1730_v61, %v3445_v2  ;;  %v1737_v3 = vsub.f32 1.0, %v1705_v48  ;;  %v3576_v61 = vmul.f32 %v1733_v49, %v3465_v17  ;;  %v252_v48 = vld [vmem:[%s3294_s9 + $0xd0] sm:$0xff] }
  0x39   : > { %v3579_v23 = vmul.f32 %v1736_v57, %v3468_v21  ;;  %v1739_v6 = vsub.f32 1.0, %v1707_v18  ;;  %v4748_v49 = vsub.f32 1.0, %v3403_v51 }
  0x3a   : > { %4741 = vst [vmem:[#allocation7_spill] sm:$0xff] %v3576_v61  ;;  %v3588_v24 = vmul.f32 %v1737_v3, %v3483_v32 }
  0x3b   : > { %4742 = vst [vmem:[#allocation8_spill] sm:$0xff] %v3579_v23  ;;  %v3594_v54 = vmul.f32 %v1739_v6, %v3506_v1  ;;  %v3605_v57 = vmul.f32 %v4748_v49, %v3403_v51  ;;  %v255_v6 = vld [vmem:[%s3294_s9 + $0xe8] sm:$0xff]  ;;  %v254_v49 = vld [vmem:[%s3294_s9 + $0xe0] sm:$0xff] }
  0x3c   : > { %347 = vperm.xlu1 %2951, %v3363_v31   ;;  %342 = vperm.xlu0 %2950, %v3371_v36   ;;  %v1708_v31 = vmul.f32 2.0, %v3392_v45  ;;  %v3573_v36 = vmul.f32 %v1734_v14, %v3457_v15  ;;  %4745 = vst [vmem:[#allocation11_spill] sm:$0xff] %v3588_v24  ;;  %v1710_v14 = vmul.f32 2.0, %v3403_v51 }
  0x3d   : > { %4747 = vst [vmem:[#allocation13_spill] sm:$0xff] %v3594_v54  ;;  %v1711_v54 = vmul.f32 2.0, %v252_v48 }
  0x3e   : > { %4740 = vst [vmem:[#allocation6_spill] sm:$0xff] %v3573_v36  ;;  %v1740_v26 = vsub.f32 1.0, %v1708_v31  ;;  %v4749_v31 = vsub.f32 1.0, %v3411_v55 }
  0x40   : > { %357 = vperm.xlu1 %2951, %v3374_v37   ;;  %352 = vperm.xlu0 %2950, %v3377_v38   ;;  %v1735_v37 = vsub.f32 1.0, %v1703_v42  ;;  %v1738_v38 = vsub.f32 1.0, %v1706_v47  ;;  %v3591_v40 = vmul.f32 %v1740_v26, %v3486_v33  ;;  %v1709_v42 = vmul.f32 2.0, %v3411_v55  ;;  %v253_v47 = vld [vmem:[%s3294_s9 + $0xd8] sm:$0xff] }
  0x41   : > { %v3610_v18 = vmul.f32 %v4749_v31, %v3411_v55  ;;  %v1616_v3 = vsub.f32 1.0, %v253_v47  ;;  %v1615_v26 = vsub.f32 1.0, %v252_v48  ;;  %v1712_v31 = vmul.f32 2.0, %v253_v47 }
  0x42   : > { %4746 = vst [vmem:[#allocation12_spill] sm:$0xff] %v3591_v40 }
  0x43   : > { %v3622_v40 = vmul.f32 %v1616_v3, %v253_v47  ;;  %v3624_v24 = vmul.f32 %v1615_v26, %v252_v48 }
  0x44   : > { %367 = vperm.xlu1 %2951, %v3386_v43   ;;  %362 = vperm.xlu0 %2950, %v3389_v44   ;;  %v3582_v43 = vmul.f32 %v1735_v37, %v3471_v22  ;;  %v3585_v44 = vmul.f32 %v1738_v38, %v3480_v28  ;;  %v1742_v37 = vsub.f32 1.0, %v1710_v14  ;;  %v1741_v38 = vsub.f32 1.0, %v1709_v42 }
  0x45   : > { %v1618_v14 = vsub.f32 1.0, %v255_v6  ;;  %v1617_v42 = vsub.f32 1.0, %v254_v49 }
  0x46   : > { %4743 = vst [vmem:[#allocation9_spill] sm:$0xff] %v3582_v43  ;;  %4744 = vst [vmem:[#allocation10_spill] sm:$0xff] %v3585_v44  ;;  %v1714_v44 = vmul.f32 2.0, %v255_v6  ;;  %v1713_v43 = vmul.f32 2.0, %v254_v49 }
  0x47   : > { %v3634_v3 = vmul.f32 %v1618_v14, %v255_v6  ;;  %v3636_v26 = vmul.f32 %v1617_v42, %v254_v49 }
  0x48   : > { %377 = vperm.xlu1 %2951, %v3392_v45   ;;  %372 = vperm.xlu0 %2950, %v3400_v50   ;;  %v3613_v45 = vmul.f32 %v1742_v37, %v3605_v57  ;;  %v3616_v50 = vmul.f32 %v1741_v38, %v3610_v18  ;;  %v1744_v37 = vsub.f32 1.0, %v1712_v31  ;;  %v257_v38 = vld [vmem:[%s3294_s9 + $0xf8] sm:$0xff]  ;;  %v1746_v31 = vsub.f32 1.0, %v1714_v44 }
  0x49   : > { %v1620_v23 = vsub.f32 1.0, %v257_v38  ;;  %v1653_v44 = vmul.f32 %v3380_v39, %v3380_v39  ;;  %v1658_v39 = vmul.f32 %v3420_v59, %v3420_v59  ;;  %v1664_v59 = vmul.f32 %v3439_v9, %v3439_v9 }
  0x4a   : > { %4750 = vst [vmem:[#allocation14_spill] sm:$0xff] %v3613_v45  ;;  %4751 = vst [vmem:[#allocation15_spill] sm:$0xff] %v3616_v50  ;;  %v1743_v45 = vsub.f32 1.0, %v1711_v54  ;;  %v256_v50 = vld [vmem:[%s3294_s9 + $0xf0] sm:$0xff]  ;;  %v1745_v54 = vsub.f32 1.0, %v1713_v43  ;;  %v1654_v43 = vmul.f32 %v3394_v46, %v3394_v46  ;;  %v1657_v46 = vmul.f32 %v3423_v60, %v3423_v60 }
  0x4b   : > { %v1619_v61 = vsub.f32 1.0, %v256_v50  ;;  %v1663_v60 = vmul.f32 %v3442_v10, %v3442_v10  ;;  %v1670_v9 = vmul.f32 %v3457_v15, %v3457_v15  ;;  %v1669_v10 = vmul.f32 %v3465_v17, %v3465_v17 }
  0x4c   : > { %387 = vperm.xlu1 %2951, %v3403_v51   ;;  %382 = vperm.xlu0 %2950, %v3411_v55   ;;  %v3629_v51 = vmul.f32 %v1744_v37, %v3622_v40  ;;  %v3632_v55 = vmul.f32 %v1743_v45, %v3624_v24  ;;  %v1716_v45 = vmul.f32 2.0, %v257_v38  ;;  %v1715_v37 = vmul.f32 2.0, %v256_v50 }
  0x4d   : > { %v1676_v15 = vmul.f32 %v3486_v33, %v3486_v33  ;;  %v1675_v17 = vmul.f32 %v3506_v1, %v3506_v1  ;;  %v1682_v33 = vmul.f32 %v3634_v3, %v3634_v3  ;;  %v1681_v1 = vmul.f32 %v3636_v26, %v3636_v26 }
  0x4e   : > { %4752 = vst [vmem:[#allocation16_spill] sm:$0xff] %v3629_v51  ;;  %4753 = vst [vmem:[#allocation17_spill] sm:$0xff] %v3632_v55  ;;  %v3644_v55 = vmul.f32 %v1620_v23, %v257_v38  ;;  %v3646_v51 = vmul.f32 %v1619_v61, %v256_v50  ;;  %v1748_v14 = vsub.f32 1.0, %v1716_v45  ;;  %v1747_v36 = vsub.f32 1.0, %v1715_v37 }
  0x4f   : > { %v1656_v61 = vmul.f32 %v3406_v52, %v3406_v52  ;;  %v1655_v23 = vmul.f32 %v3414_v56, %v3414_v56  ;;  %v1662_v52 = vmul.f32 %v3433_v0, %v3433_v0  ;;  %v1661_v56 = vmul.f32 %v3436_v4, %v3436_v4 }
  0x50   : > { %397 = vperm.xlu1 %2951, %v253_v47   ;;  %392 = vperm.xlu0 %2950, %v252_v48   ;;  %v3639_v47 = vmul.f32 %v1746_v31, %v3634_v3  ;;  %v3642_v48 = vmul.f32 %v1745_v54, %v3636_v26  ;;  %v1668_v0 = vmul.f32 %v3451_v12, %v3451_v12  ;;  %v4754_v3 = vld [vmem:[#allocation5_spill] sm:$0xff] }
  0x51   : > { %v1667_v4 = vmul.f32 %v3454_v13, %v3454_v13  ;;  %v1674_v12 = vmul.f32 %v3480_v28, %v3480_v28  ;;  %v1673_v13 = vmul.f32 %v3483_v32, %v3483_v32  ;;  %v1680_v28 = vmul.f32 %v3622_v40, %v3622_v40  ;;  %v3726_v40 = vld [vmem:[%s4702_s1 + $0x1] ss:$0 sm:$0xff] }
  0x52   : > { %v1679_v32 = vmul.f32 %v3624_v24, %v3624_v24  ;;  %v3721_v24 = vld [vmem:[%s4702_s1] ss:$0 sm:$0xff] }
  0x54   : > { %407 = vperm.xlu1 %2951, %v255_v6   ;;  %402 = vperm.xlu0 %2950, %v254_v49   ;;  %v3653_v6 = vmul.f32 %v1748_v14, %v3644_v55  ;;  %v3656_v49 = vmul.f32 %v1747_v36, %v3646_v51  ;;  %v1660_v36 = vmul.f32 %v3427_v62, %v3427_v62 }
  0x55   : > { %v1666_v62 = vmul.f32 %v3445_v2, %v3445_v2  ;;  %v1672_v2 = vmul.f32 %v3468_v21, %v3468_v21  ;;  %v1678_v21 = vmul.f32 %v3605_v57, %v3605_v57  ;;  %v1684_v57 = vmul.f32 %v3644_v55, %v3644_v55 }
  0x58   : > { %417 = vperm.xlu1 %2951, %v257_v38   ;;  %412 = vperm.xlu0 %2950, %v256_v50   ;;  %v1659_v50 = vmul.f32 %v3430_v63, %v3430_v63  ;;  %v1665_v63 = vmul.f32 %v3448_v11, %v3448_v11  ;;  %v1671_v11 = vmul.f32 %v3471_v22, %v3471_v22 }
  0x59   : > { %v1677_v22 = vmul.f32 %v3610_v18, %v3610_v18  ;;  %v1683_v18 = vmul.f32 %v3646_v51, %v3646_v51 }
  0x5c   : > { %1860 = vperm.xlu1 %2951, %v1654_v43   ;;  %1855 = vperm.xlu0 %2950, %v1653_v44  }
  0x60   : > { %1870 = vperm.xlu1 %2951, %v1656_v61   ;;  %1865 = vperm.xlu0 %2950, %v1655_v23  }
  0x64   : > { %1880 = vperm.xlu1 %2951, %v1658_v39   ;;  %1875 = vperm.xlu0 %2950, %v1657_v46  }
  0x68   : > { %1890 = vperm.xlu1 %2951, %v1660_v36   ;;  %1885 = vperm.xlu0 %2950, %v1659_v50  }
  0x6c   : > { %1900 = vperm.xlu1 %2951, %v1662_v52   ;;  %1895 = vperm.xlu0 %2950, %v1661_v56  }
  0x70   : > { %1910 = vperm.xlu1 %2951, %v1664_v59   ;;  %1905 = vperm.xlu0 %2950, %v1663_v60  }
  0x74   : > { %1920 = vperm.xlu1 %2951, %v1666_v62   ;;  %1915 = vperm.xlu0 %2950, %v1665_v63  }
  0x78   : > { %1930 = vperm.xlu1 %2951, %v1668_v0   ;;  %1925 = vperm.xlu0 %2950, %v1667_v4  }
  0x7c   : > { %1940 = vperm.xlu1 %2951, %v1670_v9   ;;  %1935 = vperm.xlu0 %2950, %v1669_v10  }
  0x80   : > { %1950 = vperm.xlu1 %2951, %v1672_v2   ;;  %1945 = vperm.xlu0 %2950, %v1671_v11  }
  0x84   : > { %1960 = vperm.xlu1 %2951, %v1674_v12   ;;  %1955 = vperm.xlu0 %2950, %v1673_v13  }
  0x88   : > { %1970 = vperm.xlu1 %2951, %v1676_v15   ;;  %1965 = vperm.xlu0 %2950, %v1675_v17  }
  0x8c   : > { %1980 = vperm.xlu1 %2951, %v1678_v21   ;;  %1975 = vperm.xlu0 %2950, %v1677_v22  }
  0x90   : > { %1990 = vperm.xlu1 %2951, %v1680_v28   ;;  %1985 = vperm.xlu0 %2950, %v1679_v32  }
  0x94   : > { %2000 = vperm.xlu1 %2951, %v1682_v33   ;;  %1995 = vperm.xlu0 %2950, %v1681_v1  }
  0x98   : > { %2010 = vperm.xlu1 %2951, %v1684_v57   ;;  %2005 = vperm.xlu0 %2950, %v1683_v18  }
  0x9b   : > { %v3728_v42 = vpop.permute.xlu1 %272  ;;  %v3730_v38 = vpop.permute.xlu0 %262 }
  0x9c   : > { %v426_v55 = vmul.f32 %v3721_v24, %v3728_v42  ;;  %v424_v51 = vmul.f32 %v3721_v24, %v3730_v38  ;;  %2156 = vperm.xlu1 %2951, %v3460_v16   ;;  %2151 = vperm.xlu0 %2950, %v4754_v3  }
  0x9e   : > { %v460_v26 = vadd.f32 %v3726_v40, %v424_v51  ;;  %v462_v45 = vadd.f32 %v3726_v40, %v426_v55 }
  0x9f   : > { %v3739_v31 = vpop.permute.xlu1 %277  ;;  %v3741_v54 = vpop.permute.xlu0 %267 }
  0xa0   : > { %v427_v37 = vmul.f32 %v3721_v24, %v3739_v31  ;;  %2166 = vperm.xlu1 %2951, %v3509_v5   ;;  %2952 = vtanh.f32 %v460_v26  ;;  %v425_v14 = vmul.f32 %v3721_v24, %v3741_v54  ;;  %2161 = vperm.xlu0 %2950, %v3512_v7  }
  0xa1   : > { %2954 = vtanh.f32 %v462_v45  ;;  %v4756_v45 = vld [vmem:[#allocation6_spill] sm:$0xff] }
  0xa2   : > { %v461_v16 = vadd.f32 %v3726_v40, %v425_v14  ;;  %v463_v61 = vadd.f32 %v3726_v40, %v427_v37  ;;  %v4757_v37 = vld [vmem:[#allocation7_spill] sm:$0xff] }
  0xa3   : > { %v3751_v44 = vpop.permute.xlu1 %287  ;;  %v3753_v43 = vpop.permute.xlu0 %282 }
  0xa4   : > { %v429_v23 = vmul.f32 %v3721_v24, %v3751_v44  ;;  %2176 = vperm.xlu1 %2951, %v3515_v8   ;;  %2956 = vtanh.f32 %v461_v16  ;;  %v428_v5 = vmul.f32 %v3721_v24, %v3753_v43  ;;  %2171 = vperm.xlu0 %2950, %v3518_v27  }
  0xa5   : > { %2958 = vtanh.f32 %v463_v61 }
  0xa6   : > { %v464_v7 = vadd.f32 %v3726_v40, %v428_v5  ;;  %v465_v36 = vadd.f32 %v3726_v40, %v429_v23 }
  0xa7   : > { %v3763_v39 = vpop.permute.xlu1 %297  ;;  %v3765_v46 = vpop.permute.xlu0 %292 }
  0xa8   : > { %v431_v50 = vmul.f32 %v3721_v24, %v3763_v39  ;;  %2186 = vperm.xlu1 %2951, %v3522_v34   ;;  %2960 = vtanh.f32 %v464_v7  ;;  %v430_v8 = vmul.f32 %v3721_v24, %v3765_v46  ;;  %2181 = vperm.xlu0 %2950, %v3525_v35  }
  0xa9   : > { %2962 = vtanh.f32 %v465_v36 }
  0xaa   : > { %v2953_v27 = vpop.eup %2952  ;;  %v466_v52 = vadd.f32 %v3726_v40, %v430_v8  ;;  %v467_v60 = vadd.f32 %v3726_v40, %v431_v50  ;;  %v4760_v50 = vld [vmem:[#allocation8_spill] sm:$0xff] }
  0xab   : > { %v3775_v56 = vpop.permute.xlu1 %307  ;;  %v3777_v59 = vpop.permute.xlu0 %302  ;;  %2720 = vmatprep.mubr.msk.f32.mxu0 %vm535_vm0, %v2953_v27  ;;  %v4761_v27 = vld [vmem:[#allocation9_spill] sm:$0xff] }
  0xac   : > { %v433_v34 = vmul.f32 %v3721_v24, %v3775_v56  ;;  %2196 = vperm.xlu1 %2951, %v3537_v19   ;;  %2964 = vtanh.f32 %v466_v52  ;;  %v432_v35 = vmul.f32 %v3721_v24, %v3777_v59  ;;  %2191 = vperm.xlu0 %2950, %v3540_v20   ;;  %v2955_v62 = vpop.eup %2954 }
  0xad   : > { %2966 = vtanh.f32 %v467_v60 }
  0xae   : > { %v2957_v63 = vpop.eup %2956  ;;  %v468_v0 = vadd.f32 %v3726_v40, %v432_v35  ;;  %v469_v10 = vadd.f32 %v3726_v40, %v433_v34 }
  0xaf   : > { %v3788_v4 = vpop.permute.xlu1 %317  ;;  %v3790_v9 = vpop.permute.xlu0 %312  ;;  %2721 = vmatmul.mubr.msk.f32.vlgmr.msra.gmra.mrb[0].mxu0 %vm535_vm0, %v2957_v63 }
  0xb0   : > { %v435_v19 = vmul.f32 %v3721_v24, %v3788_v4  ;;  %2206 = vperm.xlu1 %2951, %v3543_v25   ;;  %2968 = vtanh.f32 %v468_v0  ;;  %v434_v20 = vmul.f32 %v3721_v24, %v3790_v9  ;;  %2723 = vmatprep.mubr.msk.f32.mxu0 %vm535_vm0, %v2955_v62  ;;  %v2959_v2 = vpop.eup %2958 }
  0xb1   : > { %2201 = vperm.xlu0 %2950, %v3548_v29   ;;  %2970 = vtanh.f32 %v469_v10  ;;  %v4764_v10 = vld [vmem:[#allocation10_spill] sm:$0xff] }
  0xb2   : > { %v2961_v11 = vpop.eup %2960  ;;  %v470_v12 = vadd.f32 %v3726_v40, %v434_v20  ;;  %v471_v17 = vadd.f32 %v3726_v40, %v435_v19  ;;  %v4765_v20 = vld [vmem:[#allocation11_spill] sm:$0xff] }
  0xb3   : > { %v3802_v13 = vpop.permute.xlu1 %327  ;;  %v3804_v15 = vpop.permute.xlu0 %322  ;;  %2724 = vmatmul.mubr.msk.f32.gmra.mrb[2].mxu0 %vm535_vm0, %v2959_v2 }
  0xb4   : > { %v437_v25 = vmul.f32 %v3721_v24, %v3802_v13  ;;  %2216 = vperm.xlu1 %2951, %v3551_v30   ;;  %2972 = vtanh.f32 %v470_v12  ;;  %v436_v29 = vmul.f32 %v3721_v24, %v3804_v15  ;;  %2726 = vmatprep.mubr.msk.f32.mxu0 %vm535_vm0, %v2961_v11  ;;  %v2963_v21 = vpop.eup %2962 }
  0xb5   : > { %2211 = vperm.xlu0 %2950, %v3554_v41   ;;  %2974 = vtanh.f32 %v471_v17 }
  0xb6   : > { %v2965_v22 = vpop.eup %2964  ;;  %v472_v28 = vadd.f32 %v3726_v40, %v436_v29  ;;  %v473_v1 = vadd.f32 %v3726_v40, %v437_v25 }
  0xb7   : > { %v3816_v32 = vpop.permute.xlu1 %337  ;;  %v3818_v33 = vpop.permute.xlu0 %332  ;;  %2727 = vmatmul.mubr.msk.f32.gmra.mrb[4].mxu0 %vm535_vm0, %v2963_v21 }
  0xb8   : > { %v439_v30 = vmul.f32 %v3721_v24, %v3816_v32  ;;  %2226 = vperm.xlu1 %2951, %v3558_v53   ;;  %2976 = vtanh.f32 %v472_v28  ;;  %v438_v41 = vmul.f32 %v3721_v24, %v3818_v33  ;;  %2729 = vmatprep.mubr.msk.f32.mxu0 %vm535_vm0, %v2965_v22  ;;  %v2967_v57 = vpop.eup %2966  ;;  %v4768_v22 = vld [vmem:[#allocation12_spill] sm:$0xff] }
  0xb9   : > { %2221 = vperm.xlu0 %2950, %v3561_v58   ;;  %2978 = vtanh.f32 %v473_v1 }
  0xba   : > { %v2969_v18 = vpop.eup %2968  ;;  %v475_v55 = vadd.f32 %v3726_v40, %v439_v30  ;;  %v474_v51 = vadd.f32 %v3726_v40, %v438_v41  ;;  %v4769_v30 = vld [vmem:[#allocation13_spill] sm:$0xff] }
  0xbb   : > { %v3831_v3 = vpop.permute.xlu1 %347  ;;  %v3833_v26 = vpop.permute.xlu0 %342  ;;  %2730 = vmatmul.mubr.msk.f32.gmra.mrb[6].mxu0 %vm535_vm0, %v2967_v57 }
  0xbc   : > { %4755 = vst [vmem:[#allocation5_spill] sm:$0xff] %v3833_v26  ;;  %v441_v53 = vmul.f32 %v3721_v24, %v3831_v3  ;;  %2236 = vperm.xlu1 %2951, %v4756_v45   ;;  %2980 = vtanh.f32 %v474_v51  ;;  %v440_v58 = vmul.f32 %v3721_v24, %v3833_v26  ;;  %2732 = vmatprep.mubr.msk.f32.mxu0 %vm535_vm0, %v2969_v18  ;;  %v2971_v14 = vpop.eup %2970 }
  0xbd   : > { %2231 = vperm.xlu0 %2950, %v4757_v37   ;;  %2982 = vtanh.f32 %v475_v55  ;;  %v4772_v37 = vld [vmem:[#allocation14_spill] sm:$0xff] }
  0xbe   : > { %v477_v16 = vadd.f32 %v3726_v40, %v441_v53  ;;  %v2973_v61 = vpop.eup %2972  ;;  %v476_v23 = vadd.f32 %v3726_v40, %v440_v58 }
  0xbf   : > { %v3845_v5 = vpop.permute.xlu1 %357  ;;  %v3847_v7 = vpop.permute.xlu0 %352  ;;  %2733 = vmatmul.mubr.msk.f32.gmra.mrb[8].mxu0 %vm535_vm0, %v2971_v14 }
  0xc0   : > { %4758 = vst [vmem:[#allocation6_spill] sm:$0xff] %v3845_v5  ;;  %4759 = vst [vmem:[#allocation7_spill] sm:$0xff] %v3847_v7  ;;  %2984 = vtanh.f32 %v477_v16  ;;  %v443_v36 = vmul.f32 %v3721_v24, %v3845_v5  ;;  %2246 = vperm.xlu1 %2951, %v4760_v50   ;;  %v442_v8 = vmul.f32 %v3721_v24, %v3847_v7  ;;  %2735 = vmatprep.mubr.msk.f32.mxu0 %vm535_vm0, %v2973_v61  ;;  %v2975_v52 = vpop.eup %2974  ;;  %v4773_v61 = vld [vmem:[#allocation15_spill] sm:$0xff] }
  0xc1   : > { %2986 = vtanh.f32 %v476_v23  ;;  %2241 = vperm.xlu0 %2950, %v4761_v27  }
  0xc2   : > { %v479_v60 = vadd.f32 %v3726_v40, %v443_v36  ;;  %v2977_v34 = vpop.eup %2976  ;;  %v478_v35 = vadd.f32 %v3726_v40, %v442_v8 }
  0xc3   : > { %v3859_v62 = vpop.permute.xlu1 %367  ;;  %v3861_v63 = vpop.permute.xlu0 %362  ;;  %2736 = vmatmul.mubr.msk.f32.gmra.mrb[10].mxu0 %vm535_vm0, %v2975_v52 }
  0xc4   : > { %4762 = vst [vmem:[#allocation8_spill] sm:$0xff] %v3859_v62  ;;  %4763 = vst [vmem:[#allocation9_spill] sm:$0xff] %v3861_v63  ;;  %2988 = vtanh.f32 %v479_v60  ;;  %v445_v0 = vmul.f32 %v3721_v24, %v3859_v62  ;;  %2256 = vperm.xlu1 %2951, %v4764_v10   ;;  %v444_v19 = vmul.f32 %v3721_v24, %v3861_v63  ;;  %2738 = vmatprep.mubr.msk.f32.mxu0 %vm535_vm0, %v2977_v34  ;;  %v2979_v2 = vpop.eup %2978  ;;  %v4776_v60 = vld [vmem:[#allocation16_spill] sm:$0xff]  ;;  %v4259_v63 = vld [vmem:[%s4705_s4 + $0x20] ss:$0 sm:$0xff] }
  0xc5   : > { %2990 = vtanh.f32 %v478_v35  ;;  %2251 = vperm.xlu0 %2950, %v4765_v20  }
  0xc6   : > { %v481_v11 = vadd.f32 %v3726_v40, %v445_v0  ;;  %v2981_v12 = vpop.eup %2980  ;;  %v480_v17 = vadd.f32 %v3726_v40, %v444_v19  ;;  %v4777_v0 = vld [vmem:[#allocation17_spill] sm:$0xff] }
  0xc7   : > { %v3873_v25 = vpop.permute.xlu1 %377  ;;  %v3875_v29 = vpop.permute.xlu0 %372  ;;  %2739 = vmatmul.mubr.msk.f32.gmra.mrb[12].mxu0 %vm535_vm0, %v2979_v2 }
  0xc8   : > { %4766 = vst [vmem:[#allocation10_spill] sm:$0xff] %v3873_v25  ;;  %4767 = vst [vmem:[#allocation11_spill] sm:$0xff] %v3875_v29  ;;  %2992 = vtanh.f32 %v481_v11  ;;  %v447_v21 = vmul.f32 %v3721_v24, %v3873_v25  ;;  %2266 = vperm.xlu1 %2951, %v4768_v22   ;;  %v2983_v28 = vpop.eup %2982  ;;  %v446_v1 = vmul.f32 %v3721_v24, %v3875_v29  ;;  %2741 = vmatprep.mubr.msk.f32.mxu0 %vm535_vm0, %v2981_v12 }
  0xc9   : > { %2994 = vtanh.f32 %v480_v17  ;;  %2261 = vperm.xlu0 %2950, %v4769_v30  }
  0xca   : > { %v2985_v41 = vpop.eup %2984  ;;  %v483_v57 = vadd.f32 %v3726_v40, %v447_v21  ;;  %v482_v55 = vadd.f32 %v3726_v40, %v446_v1 }
  0xcb   : > { %v2987_v18 = vpop.eup %2986  ;;  %v3887_v51 = vpop.permute.xlu1 %387  ;;  %2742 = vmatmul.mubr.msk.f32.gmra.mrb[14].mxu0 %vm535_vm0, %v2983_v28 }
  0xcc   : > { %4770 = vst [vmem:[#allocation12_spill] sm:$0xff] %v3887_v51  ;;  %v3889_v53 = vpop.permute.xlu0 %382  ;;  %2996 = vtanh.f32 %v483_v57  ;;  %v449_v45 = vmul.f32 %v3721_v24, %v3887_v51  ;;  %2744 = vmatprep.mubr.msk.f32.mxu1 %vm535_vm0, %v2987_v18  ;;  %2276 = vperm.xlu1 %2951, %v4772_v37   ;;  %v2523_v18 = vld [vmem:[%s4703_s2 + $0x20] sm:$0xff] }
  0xcd   : > { %4771 = vst [vmem:[#allocation13_spill] sm:$0xff] %v3889_v53  ;;  %2998 = vtanh.f32 %v482_v55  ;;  %v448_v58 = vmul.f32 %v3721_v24, %v3889_v53  ;;  %2745 = vmatmul.mubr.msk.f32.vlgmr.msra.gmra.mrb[0].mxu1 %vm535_vm0, %v2985_v41  ;;  %2271 = vperm.xlu0 %2950, %v4773_v61   ;;  %v2524_v55 = vld [vmem:[%s4703_s2 + $0x28] sm:$0xff] }
  0xce   : > { %v2989_v14 = vpop.eup %2988  ;;  %v485_v16 = vadd.f32 %v3726_v40, %v449_v45 }
  0xcf   : > { %v2991_v23 = vpop.eup %2990  ;;  %v484_v36 = vadd.f32 %v3726_v40, %v448_v58  ;;  %v3902_v50 = vpop.permute.xlu1 %397  ;;  %v2888_v58 = vpack.c.bf16 %v2524_v55, %v2523_v18 }
  0xd0   : > { %4774 = vst [vmem:[#allocation14_spill] sm:$0xff] %v3902_v50  ;;  %v3904_v8 = vpop.permute.xlu0 %392  ;;  %3000 = vtanh.f32 %v485_v16  ;;  %v451_v27 = vmul.f32 %v3721_v24, %v3902_v50  ;;  %2747 = vmatprep.mubr.msk.f32.mxu1 %vm535_vm0, %v2991_v23  ;;  %2286 = vperm.xlu1 %2951, %v4776_v60   ;;  %v1257_v60 = vld [vmem:[%s4705_s4 + $0x10] sm:$0xff] }
  0xd1   : > { %4775 = vst [vmem:[#allocation15_spill] sm:$0xff] %v3904_v8  ;;  %3002 = vtanh.f32 %v484_v36  ;;  %v450_v52 = vmul.f32 %v3721_v24, %v3904_v8  ;;  %2748 = vmatmul.mubr.msk.f32.gmra.mrb[2].mxu1 %vm535_vm0, %v2989_v14  ;;  %2281 = vperm.xlu0 %2950, %v4777_v0  }
  0xd2   : > { %v2993_v34 = vpop.eup %2992  ;;  %v487_v35 = vadd.f32 %v3726_v40, %v451_v27  ;;  %2889 = vmatprep.subr.bf16.mxu1 %v2888_v58  ;;  %v1255_v27 = vld [vmem:[%s4705_s4] sm:$0xff] }
  0xd3   : > { %v2995_v10 = vpop.eup %2994  ;;  %v486_v19 = vadd.f32 %v3726_v40, %v450_v52  ;;  %v3916_v20 = vpop.permute.xlu1 %407  ;;  %2891 = vmatpush3.bf16.msra.mxu1 %v2888_v58  ;;  %v1256_v52 = vld [vmem:[%s4705_s4 + $0x8] sm:$0xff] }
  0xd4   : > { %4778 = vst [vmem:[#allocation16_spill] sm:$0xff] %v3916_v20  ;;  %v3918_v2 = vpop.permute.xlu0 %402  ;;  %3004 = vtanh.f32 %v487_v35  ;;  %v453_v11 = vmul.f32 %v3721_v24, %v3916_v20  ;;  %2750 = vmatprep.mubr.msk.f32.mxu1 %vm535_vm0, %v2995_v10  ;;  %2296 = vperm.xlu1 %2951, %v3639_v47   ;;  %v1258_v35 = vld [vmem:[%s4705_s4 + $0x18] sm:$0xff]  ;;  %v3979_v10 = vld [vmem:[%s4704_s3] ss:$0 sm:$0xff] }
  0xd5   : > { %4779 = vst [vmem:[#allocation17_spill] sm:$0xff] %v3918_v2  ;;  %3006 = vtanh.f32 %v486_v19  ;;  %v452_v12 = vmul.f32 %v3721_v24, %v3918_v2  ;;  %2751 = vmatmul.mubr.msk.f32.gmra.mrb[4].mxu1 %vm535_vm0, %v2993_v34  ;;  %2291 = vperm.xlu0 %2950, %v3642_v48   ;;  %v2896_v34 = vpack.c.bf16 %v1256_v52, %v1255_v27 }
  0xd6   : > { %v2997_v17 = vpop.eup %2996  ;;  %v489_v21 = vadd.f32 %v3726_v40, %v453_v11  ;;  %v2900_v0 = vpack.c.bf16 %v1258_v35, %v1257_v60 }
  0xd7   : > { %v2999_v22 = vpop.eup %2998  ;;  %v488_v28 = vadd.f32 %v3726_v40, %v452_v12  ;;  %v3930_v1 = vpop.permute.xlu1 %417  ;;  %2897 = vmatprep.subr.bf16.mxu0 %v2896_v34 }
  0xd8   : > { %4780 = vst [vmem:[#allocation18_spill] sm:$0xff] %v3930_v1  ;;  %v3932_v30 = vpop.permute.xlu0 %412  ;;  %3008 = vtanh.f32 %v489_v21  ;;  %v455_v41 = vmul.f32 %v3721_v24, %v3930_v1  ;;  %2753 = vmatprep.mubr.msk.f32.mxu1 %vm535_vm0, %v2999_v22  ;;  %2306 = vperm.xlu1 %2951, %v3653_v6  }
  0xd9   : > { %4781 = vst [vmem:[#allocation19_spill] sm:$0xff] %v3932_v30  ;;  %3010 = vtanh.f32 %v488_v28  ;;  %v454_v47 = vmul.f32 %v3721_v24, %v3932_v30  ;;  %2754 = vmatmul.mubr.msk.f32.gmra.mrb[6].mxu1 %vm535_vm0, %v2997_v17  ;;  %2301 = vperm.xlu0 %2950, %v3656_v49   ;;  %v2525_v24 = vld [vmem:[%s4703_s2 + $0x30] sm:$0xff]  ;;  %v2526_v49 = vld [vmem:[%s4703_s2 + $0x38] sm:$0xff] }
  0xda   : > { %v3001_v48 = vpop.eup %3000  ;;  %v491_v57 = vadd.f32 %v3726_v40, %v455_v41  ;;  %v2892_v37 = vpack.c.bf16 %v2526_v49, %v2525_v24  ;;  %2899 = vmatpush3.bf16.msra.mxu0 %v2896_v34 }
  0xdb   : > { %v3003_v6 = vpop.eup %3002  ;;  %v490_v45 = vadd.f32 %v3726_v40, %v454_v47  ;;  %2901 = vmatprep.subr.bf16.mxu0 %v2900_v0 }
  0xdc   : > { %3012 = vtanh.f32 %v491_v57  ;;  %2756 = vmatprep.mubr.msk.f32.mxu1 %vm535_vm0, %v3003_v6  ;;  %2893 = vmatprep.subr.bf16.mxu1 %v2892_v37 }
  0xdd   : > { %3014 = vtanh.f32 %v490_v45  ;;  %2757 = vmatmul.mubr.msk.f32.gmra.mrb[8].mxu1 %vm535_vm0, %v3001_v48 }
  0xde   : > { %v3005_v14 = vpop.eup %3004  ;;  %2895 = vmatpush3.bf16.msra.mxu1 %v2892_v37  ;;  %2903 = vmatpush3.bf16.msra.mxu0 %v2900_v0 }
  0xdf   : > { %v3007_v16 = vpop.eup %3006 }
  0xe0   : > { %2759 = vmatprep.mubr.msk.f32.mxu1 %vm535_vm0, %v3007_v16 }
  0xe1   : > { %2760 = vmatmul.mubr.msk.f32.gmra.mrb[10].mxu1 %vm535_vm0, %v3005_v14 }
  0xe2   : > { %v3009_v40 = vpop.eup %3008 }
  0xe3   : > { %v3011_v61 = vpop.eup %3010 }
  0xe4   : > { %2762 = vmatprep.mubr.msk.f32.mxu1 %vm535_vm0, %v3011_v61 }
  0xe5   : > { %2763 = vmatmul.mubr.msk.f32.gmra.mrb[12].mxu1 %vm535_vm0, %v3009_v40 }
  0xe6   : > { %v3013_v23 = vpop.eup %3012 }
  0xe7   : > { %v3015_v36 = vpop.eup %3014 }
  0xe8   : > { %2765 = vmatprep.mubr.msk.f32.mxu1 %vm535_vm0, %v3015_v36 }
  0xe9   : > { %2766 = vmatmul.mubr.msk.f32.gmra.mrb[14].mxu1 %vm535_vm0, %v3013_v23 }
 0x182   : > { %v2722_v19 = vpop.f32.mrb[0].mxu0 }
 0x183   : > { %v704_v11 = vadd.f32 %v2722_v19, %v3979_v10  ;;  %v698_v12 = vpop.f32.mrb[1].mxu0 }
 0x184   : > { %v699_v17 = vadd.f32 %v3979_v10, %v698_v12 }
 0x186   : > { %3016 = vtanh.f32 %v699_v17  ;;  %v2725_v21 = vpop.f32.mrb[2].mxu0 }
 0x187   : > { %3018 = vtanh.f32 %v704_v11  ;;  %v714_v22 = vadd.f32 %v2725_v21, %v3979_v10  ;;  %v708_v28 = vpop.f32.mrb[3].mxu0 }
 0x188   : > { %v709_v41 = vadd.f32 %v3979_v10, %v708_v28 }
 0x18a   : > { %3020 = vtanh.f32 %v709_v41  ;;  %v2728_v47 = vpop.f32.mrb[4].mxu0 }
 0x18b   : > { %3022 = vtanh.f32 %v714_v22  ;;  %v724_v48 = vadd.f32 %v2728_v47, %v3979_v10  ;;  %v718_v57 = vpop.f32.mrb[5].mxu0 }
 0x18c   : > { %v719_v18 = vadd.f32 %v3979_v10, %v718_v57 }
 0x18e   : > { %3024 = vtanh.f32 %v719_v18  ;;  %v2731_v55 = vpop.f32.mrb[6].mxu0 }
 0x18f   : > { %3026 = vtanh.f32 %v724_v48  ;;  %v734_v24 = vadd.f32 %v2731_v55, %v3979_v10  ;;  %v728_v6 = vpop.f32.mrb[7].mxu0 }
 0x190   : > { %v3017_v45 = vpop.eup %3016  ;;  %v729_v58 = vadd.f32 %v3979_v10, %v728_v6 }
 0x191   : > { %v3019_v49 = vpop.eup %3018  ;;  %2776 = vmatprep.mubr.msk.f32.mxu1 %vm535_vm0, %v3017_v45 }
 0x192   : > { %3028 = vtanh.f32 %v729_v58  ;;  %v2734_v37 = vpop.f32.mrb[8].mxu0  ;;  %2777 = vmatmul.mubr.msk.f32.vlgmr.msra.gmra.mrb[16].mxu1 %vm535_vm0, %v3019_v49 }
 0x193   : > { %3030 = vtanh.f32 %v734_v24  ;;  %v744_v14 = vadd.f32 %v2734_v37, %v3979_v10  ;;  %v738_v16 = vpop.f32.mrb[9].mxu0 }
 0x194   : > { %v3021_v40 = vpop.eup %3020  ;;  %v739_v61 = vadd.f32 %v3979_v10, %v738_v16 }
 0x195   : > { %v3023_v23 = vpop.eup %3022  ;;  %2779 = vmatprep.mubr.msk.f32.mxu1 %vm535_vm0, %v3021_v40 }
 0x196   : > { %3032 = vtanh.f32 %v739_v61  ;;  %v2737_v36 = vpop.f32.mrb[10].mxu0  ;;  %2780 = vmatmul.mubr.msk.f32.gmra.mrb[18].mxu1 %vm535_vm0, %v3023_v23 }
 0x197   : > { %3034 = vtanh.f32 %v744_v14  ;;  %v754_v27 = vadd.f32 %v2737_v36, %v3979_v10  ;;  %v748_v52 = vpop.f32.mrb[11].mxu0 }
 0x198   : > { %v3025_v60 = vpop.eup %3024  ;;  %v749_v34 = vadd.f32 %v3979_v10, %v748_v52 }
 0x199   : > { %v3027_v35 = vpop.eup %3026  ;;  %2782 = vmatprep.mubr.msk.f32.mxu1 %vm535_vm0, %v3025_v60 }
 0x19a   : > { %3036 = vtanh.f32 %v749_v34  ;;  %v2740_v0 = vpop.f32.mrb[12].mxu0  ;;  %2783 = vmatmul.mubr.msk.f32.gmra.mrb[20].mxu1 %vm535_vm0, %v3027_v35 }
 0x19b   : > { %3038 = vtanh.f32 %v754_v27  ;;  %v764_v19 = vadd.f32 %v2740_v0, %v3979_v10  ;;  %v758_v11 = vpop.f32.mrb[13].mxu0 }
 0x19c   : > { %v3029_v12 = vpop.eup %3028  ;;  %v759_v17 = vadd.f32 %v3979_v10, %v758_v11 }
 0x19d   : > { %v3031_v21 = vpop.eup %3030  ;;  %2785 = vmatprep.mubr.msk.f32.mxu1 %vm535_vm0, %v3029_v12 }
 0x19e   : > { %3040 = vtanh.f32 %v759_v17  ;;  %v2743_v22 = vpop.f32.mrb[14].mxu0  ;;  %2786 = vmatmul.mubr.msk.f32.gmra.mrb[22].mxu1 %vm535_vm0, %v3031_v21 }
 0x19f   : > { %3042 = vtanh.f32 %v764_v19  ;;  %v774_v28 = vadd.f32 %v2743_v22, %v3979_v10  ;;  %v768_v41 = vpop.f32.mrb[15].mxu0 }
 0x1a0   : > { %v2746_v47 = vpop.f32.mrb[0].mxu1  ;;  %v3033_v48 = vpop.eup %3032  ;;  %v769_v57 = vadd.f32 %v3979_v10, %v768_v41 }
 0x1a1   : > { %v778_v18 = vpop.f32.mrb[1].mxu1  ;;  %v3035_v55 = vpop.eup %3034  ;;  %2788 = vmatprep.mubr.msk.f32.mxu1 %vm535_vm0, %v3033_v48  ;;  %v784_v6 = vadd.f32 %v2746_v47, %v3979_v10 }
 0x1a2   : > { %v779_v24 = vadd.f32 %v3979_v10, %v778_v18  ;;  %3044 = vtanh.f32 %v769_v57  ;;  %2789 = vmatmul.mubr.msk.f32.gmra.mrb[24].mxu1 %vm535_vm0, %v3035_v55 }
 0x1a3   : > { %3046 = vtanh.f32 %v774_v28 }
 0x1a4   : > { %v2749_v45 = vpop.f32.mrb[2].mxu1  ;;  %v3037_v58 = vpop.eup %3036  ;;  %3048 = vtanh.f32 %v779_v24 }
 0x1a5   : > { %v788_v49 = vpop.f32.mrb[3].mxu1  ;;  %v3039_v37 = vpop.eup %3038  ;;  %2791 = vmatprep.mubr.msk.f32.mxu1 %vm535_vm0, %v3037_v58  ;;  %3050 = vtanh.f32 %v784_v6  ;;  %v794_v16 = vadd.f32 %v2749_v45, %v3979_v10 }
 0x1a6   : > { %v789_v14 = vadd.f32 %v3979_v10, %v788_v49  ;;  %2792 = vmatmul.mubr.msk.f32.gmra.mrb[26].mxu1 %vm535_vm0, %v3039_v37 }
 0x1a8   : > { %3052 = vtanh.f32 %v789_v14  ;;  %v2752_v40 = vpop.f32.mrb[4].mxu1  ;;  %v3041_v61 = vpop.eup %3040 }
 0x1a9   : > { %v798_v23 = vpop.f32.mrb[5].mxu1  ;;  %v3043_v36 = vpop.eup %3042  ;;  %2794 = vmatprep.mubr.msk.f32.mxu1 %vm535_vm0, %v3041_v61  ;;  %3054 = vtanh.f32 %v794_v16  ;;  %v804_v52 = vadd.f32 %v2752_v40, %v3979_v10 }
 0x1aa   : > { %v799_v27 = vadd.f32 %v3979_v10, %v798_v23  ;;  %2795 = vmatmul.mubr.msk.f32.gmra.mrb[28].mxu1 %vm535_vm0, %v3043_v36 }
 0x1ac   : > { %3056 = vtanh.f32 %v799_v27  ;;  %v2755_v60 = vpop.f32.mrb[6].mxu1  ;;  %v3045_v34 = vpop.eup %3044 }
 0x1ad   : > { %v808_v35 = vpop.f32.mrb[7].mxu1  ;;  %v3047_v0 = vpop.eup %3046  ;;  %2797 = vmatprep.mubr.msk.f32.mxu1 %vm535_vm0, %v3045_v34  ;;  %3058 = vtanh.f32 %v804_v52  ;;  %v814_v12 = vadd.f32 %v2755_v60, %v3979_v10 }
 0x1ae   : > { %v809_v19 = vadd.f32 %v3979_v10, %v808_v35  ;;  %v3049_v11 = vpop.eup %3048  ;;  %2798 = vmatmul.mubr.msk.f32.gmra.mrb[30].mxu1 %vm535_vm0, %v3047_v0 }
 0x1af   : > { %2800 = vmatprep.mubr.msk.f32.mxu1 %vm535_vm0, %v3049_v11  ;;  %v3051_v21 = vpop.eup %3050 }
 0x1b0   : > { %3060 = vtanh.f32 %v809_v19  ;;  %v2758_v17 = vpop.f32.mrb[8].mxu1 }
 0x1b1   : > { %v818_v22 = vpop.f32.mrb[9].mxu1  ;;  %3062 = vtanh.f32 %v814_v12  ;;  %v824_v47 = vadd.f32 %v2758_v17, %v3979_v10  ;;  %v4048_v12 = vld [vmem:[%s4704_s3 + $0x1] ss:$0 sm:$0xff] }
 0x1b2   : > { %v3053_v28 = vpop.eup %3052  ;;  %v819_v41 = vadd.f32 %v3979_v10, %v818_v22  ;;  %2801 = vmatmul.mubr.msk.f32.gmra.mrb[32].mxu1 %vm535_vm0, %v3051_v21 }
 0x1b3   : > { %2803 = vmatprep.mubr.msk.f32.mxu1 %vm535_vm0, %v3053_v28  ;;  %v3055_v57 = vpop.eup %3054 }
 0x1b4   : > { %3064 = vtanh.f32 %v819_v41  ;;  %v2761_v48 = vpop.f32.mrb[10].mxu1 }
 0x1b5   : > { %v828_v18 = vpop.f32.mrb[11].mxu1  ;;  %3066 = vtanh.f32 %v824_v47  ;;  %v834_v6 = vadd.f32 %v2761_v48, %v3979_v10 }
 0x1b6   : > { %v3057_v55 = vpop.eup %3056  ;;  %v829_v24 = vadd.f32 %v3979_v10, %v828_v18  ;;  %2804 = vmatmul.mubr.msk.f32.gmra.mrb[34].mxu1 %vm535_vm0, %v3055_v57 }
 0x1b7   : > { %2806 = vmatprep.mubr.msk.f32.mxu1 %vm535_vm0, %v3057_v55  ;;  %v3059_v58 = vpop.eup %3058 }
 0x1b8   : > { %3068 = vtanh.f32 %v829_v24  ;;  %v2764_v45 = vpop.f32.mrb[12].mxu1 }
 0x1b9   : > { %v838_v49 = vpop.f32.mrb[13].mxu1  ;;  %3070 = vtanh.f32 %v834_v6  ;;  %v844_v16 = vadd.f32 %v2764_v45, %v3979_v10 }
 0x1ba   : > { %v3061_v37 = vpop.eup %3060  ;;  %v839_v14 = vadd.f32 %v3979_v10, %v838_v49  ;;  %2807 = vmatmul.mubr.msk.f32.gmra.mrb[36].mxu1 %vm535_vm0, %v3059_v58 }
 0x1bb   : > { %2809 = vmatprep.mubr.msk.f32.mxu1 %vm535_vm0, %v3061_v37  ;;  %v3063_v61 = vpop.eup %3062 }
 0x1bc   : > { %3072 = vtanh.f32 %v839_v14  ;;  %v2767_v40 = vpop.f32.mrb[14].mxu1 }
 0x1bd   : > { %v848_v23 = vpop.f32.mrb[15].mxu1  ;;  %3074 = vtanh.f32 %v844_v16  ;;  %v854_v52 = vadd.f32 %v2767_v40, %v3979_v10 }
 0x1be   : > { %v3065_v36 = vpop.eup %3064  ;;  %v849_v27 = vadd.f32 %v3979_v10, %v848_v23  ;;  %2810 = vmatmul.mubr.msk.f32.gmra.mrb[38].mxu1 %vm535_vm0, %v3063_v61 }
 0x1bf   : > { %2812 = vmatprep.mubr.msk.f32.mxu1 %vm535_vm0, %v3065_v36  ;;  %v3067_v60 = vpop.eup %3066 }
 0x1c0   : > { %3076 = vtanh.f32 %v849_v27 }
 0x1c1   : > { %3078 = vtanh.f32 %v854_v52 }
 0x1c2   : > { %v3069_v34 = vpop.eup %3068  ;;  %2813 = vmatmul.mubr.msk.f32.gmra.mrb[40].mxu1 %vm535_vm0, %v3067_v60 }
 0x1c3   : > { %2815 = vmatprep.mubr.msk.f32.mxu1 %vm535_vm0, %v3069_v34  ;;  %v3071_v35 = vpop.eup %3070 }
 0x1c6   : > { %v3073_v0 = vpop.eup %3072  ;;  %2816 = vmatmul.mubr.msk.f32.gmra.mrb[42].mxu1 %vm535_vm0, %v3071_v35 }
 0x1c7   : > { %2818 = vmatprep.mubr.msk.f32.mxu1 %vm535_vm0, %v3073_v0  ;;  %v3075_v19 = vpop.eup %3074 }
 0x1ca   : > { %v3077_v11 = vpop.eup %3076  ;;  %2819 = vmatmul.mubr.msk.f32.gmra.mrb[44].mxu1 %vm535_vm0, %v3075_v19 }
 0x1cb   : > { %2821 = vmatprep.mubr.msk.f32.mxu1 %vm535_vm0, %v3077_v11  ;;  %v3079_v10 = vpop.eup %3078 }
 0x1ce   : > { %2822 = vmatmul.mubr.msk.f32.gmra.mrb[46].mxu1 %vm535_vm0, %v3079_v10 }
 0x265   : > { %v2778_v17 = vpop.f32.mrb[16].mxu1 }
 0x266   : > { %v1070_v21 = vadd.f32 %v2778_v17, %v4048_v12  ;;  %v1064_v22 = vpop.f32.mrb[17].mxu1 }
 0x267   : > { %v1065_v28 = vadd.f32 %v4048_v12, %v1064_v22 }
 0x269   : > { %3080 = vtanh.f32 %v1065_v28  ;;  %v2781_v41 = vpop.f32.mrb[18].mxu1 }
 0x26a   : > { %3082 = vtanh.f32 %v1070_v21  ;;  %v1080_v47 = vadd.f32 %v2781_v41, %v4048_v12  ;;  %v1074_v48 = vpop.f32.mrb[19].mxu1 }
 0x26b   : > { %v1075_v57 = vadd.f32 %v4048_v12, %v1074_v48 }
 0x26d   : > { %3084 = vtanh.f32 %v1075_v57  ;;  %v2784_v18 = vpop.f32.mrb[20].mxu1 }
 0x26e   : > { %3086 = vtanh.f32 %v1080_v47  ;;  %v1090_v55 = vadd.f32 %v2784_v18, %v4048_v12  ;;  %v1084_v24 = vpop.f32.mrb[21].mxu1 }
 0x26f   : > { %v1085_v6 = vadd.f32 %v4048_v12, %v1084_v24 }
 0x271   : > { %3088 = vtanh.f32 %v1085_v6  ;;  %v2787_v45 = vpop.f32.mrb[22].mxu1 }
 0x272   : > { %3090 = vtanh.f32 %v1090_v55  ;;  %v1100_v58 = vadd.f32 %v2787_v45, %v4048_v12  ;;  %v1094_v49 = vpop.f32.mrb[23].mxu1 }
 0x273   : > { %v3081_v37 = vpop.eup %3080  ;;  %v1095_v14 = vadd.f32 %v4048_v12, %v1094_v49 }
 0x274   : > { %v3083_v16 = vpop.eup %3082  ;;  %2832 = vmatprep.mubr.msk.f32.mxu0 %vm535_vm0, %v3081_v37 }
 0x275   : > { %3092 = vtanh.f32 %v1095_v14  ;;  %v2790_v40 = vpop.f32.mrb[24].mxu1  ;;  %2833 = vmatmul.mubr.msk.f32.vlgmr.msra.gmra.mrb[16].mxu0 %vm535_vm0, %v3083_v16 }
 0x276   : > { %3094 = vtanh.f32 %v1100_v58  ;;  %v1110_v61 = vadd.f32 %v2790_v40, %v4048_v12  ;;  %v1104_v23 = vpop.f32.mrb[25].mxu1 }
 0x277   : > { %v3085_v36 = vpop.eup %3084  ;;  %v1105_v27 = vadd.f32 %v4048_v12, %v1104_v23 }
 0x278   : > { %v3087_v52 = vpop.eup %3086  ;;  %2835 = vmatprep.mubr.msk.f32.mxu0 %vm535_vm0, %v3085_v36 }
 0x279   : > { %3096 = vtanh.f32 %v1105_v27  ;;  %v2793_v60 = vpop.f32.mrb[26].mxu1  ;;  %2836 = vmatmul.mubr.msk.f32.gmra.mrb[18].mxu0 %vm535_vm0, %v3087_v52 }
 0x27a   : > { %3098 = vtanh.f32 %v1110_v61  ;;  %v1120_v34 = vadd.f32 %v2793_v60, %v4048_v12  ;;  %v1114_v35 = vpop.f32.mrb[27].mxu1 }
 0x27b   : > { %v3089_v0 = vpop.eup %3088  ;;  %v1115_v19 = vadd.f32 %v4048_v12, %v1114_v35 }
 0x27c   : > { %v3091_v11 = vpop.eup %3090  ;;  %2838 = vmatprep.mubr.msk.f32.mxu0 %vm535_vm0, %v3089_v0 }
 0x27d   : > { %3100 = vtanh.f32 %v1115_v19  ;;  %v2796_v10 = vpop.f32.mrb[28].mxu1  ;;  %2839 = vmatmul.mubr.msk.f32.gmra.mrb[20].mxu0 %vm535_vm0, %v3091_v11 }
 0x27e   : > { %3102 = vtanh.f32 %v1120_v34  ;;  %v1130_v17 = vadd.f32 %v2796_v10, %v4048_v12  ;;  %v1124_v21 = vpop.f32.mrb[29].mxu1 }
 0x27f   : > { %v3093_v22 = vpop.eup %3092  ;;  %v1125_v28 = vadd.f32 %v4048_v12, %v1124_v21 }
 0x280   : > { %v3095_v41 = vpop.eup %3094  ;;  %2841 = vmatprep.mubr.msk.f32.mxu0 %vm535_vm0, %v3093_v22 }
 0x281   : > { %3104 = vtanh.f32 %v1125_v28  ;;  %v2799_v47 = vpop.f32.mrb[30].mxu1  ;;  %2842 = vmatmul.mubr.msk.f32.gmra.mrb[22].mxu0 %vm535_vm0, %v3095_v41 }
 0x282   : > { %3106 = vtanh.f32 %v1130_v17  ;;  %v1140_v48 = vadd.f32 %v2799_v47, %v4048_v12  ;;  %v1134_v57 = vpop.f32.mrb[31].mxu1 }
 0x283   : > { %v3097_v18 = vpop.eup %3096  ;;  %v1135_v55 = vadd.f32 %v4048_v12, %v1134_v57 }
 0x284   : > { %v3099_v24 = vpop.eup %3098  ;;  %2844 = vmatprep.mubr.msk.f32.mxu0 %vm535_vm0, %v3097_v18 }
 0x285   : > { %3108 = vtanh.f32 %v1135_v55  ;;  %v2802_v6 = vpop.f32.mrb[32].mxu1  ;;  %2845 = vmatmul.mubr.msk.f32.gmra.mrb[24].mxu0 %vm535_vm0, %v3099_v24 }
 0x286   : > { %3110 = vtanh.f32 %v1140_v48  ;;  %v1150_v45 = vadd.f32 %v2802_v6, %v4048_v12  ;;  %v1144_v58 = vpop.f32.mrb[33].mxu1 }
 0x287   : > { %v3101_v49 = vpop.eup %3100  ;;  %v1145_v37 = vadd.f32 %v4048_v12, %v1144_v58 }
 0x288   : > { %v3103_v14 = vpop.eup %3102  ;;  %2847 = vmatprep.mubr.msk.f32.mxu0 %vm535_vm0, %v3101_v49 }
 0x289   : > { %3112 = vtanh.f32 %v1145_v37  ;;  %v2805_v16 = vpop.f32.mrb[34].mxu1  ;;  %2848 = vmatmul.mubr.msk.f32.gmra.mrb[26].mxu0 %vm535_vm0, %v3103_v14 }
 0x28a   : > { %3114 = vtanh.f32 %v1150_v45  ;;  %v1160_v40 = vadd.f32 %v2805_v16, %v4048_v12  ;;  %v1154_v61 = vpop.f32.mrb[35].mxu1 }
 0x28b   : > { %v3105_v23 = vpop.eup %3104  ;;  %v1155_v36 = vadd.f32 %v4048_v12, %v1154_v61 }
 0x28c   : > { %v3107_v27 = vpop.eup %3106  ;;  %2850 = vmatprep.mubr.msk.f32.mxu0 %vm535_vm0, %v3105_v23 }
 0x28d   : > { %3116 = vtanh.f32 %v1155_v36  ;;  %v2808_v52 = vpop.f32.mrb[36].mxu1  ;;  %2851 = vmatmul.mubr.msk.f32.gmra.mrb[28].mxu0 %vm535_vm0, %v3107_v27 }
 0x28e   : > { %3118 = vtanh.f32 %v1160_v40  ;;  %v1170_v60 = vadd.f32 %v2808_v52, %v4048_v12  ;;  %v1164_v34 = vpop.f32.mrb[37].mxu1 }
 0x28f   : > { %v3109_v35 = vpop.eup %3108  ;;  %v1165_v0 = vadd.f32 %v4048_v12, %v1164_v34 }
 0x290   : > { %v3111_v19 = vpop.eup %3110  ;;  %2853 = vmatprep.mubr.msk.f32.mxu0 %vm535_vm0, %v3109_v35 }
 0x291   : > { %3120 = vtanh.f32 %v1165_v0  ;;  %v2811_v11 = vpop.f32.mrb[38].mxu1  ;;  %2854 = vmatmul.mubr.msk.f32.gmra.mrb[30].mxu0 %vm535_vm0, %v3111_v19 }
 0x292   : > { %3122 = vtanh.f32 %v1170_v60  ;;  %v1180_v10 = vadd.f32 %v2811_v11, %v4048_v12  ;;  %v1174_v17 = vpop.f32.mrb[39].mxu1 }
 0x293   : > { %v3113_v21 = vpop.eup %3112  ;;  %v1175_v22 = vadd.f32 %v4048_v12, %v1174_v17 }
 0x294   : > { %v3115_v28 = vpop.eup %3114  ;;  %2856 = vmatprep.mubr.msk.f32.mxu0 %vm535_vm0, %v3113_v21 }
 0x295   : > { %3124 = vtanh.f32 %v1175_v22  ;;  %v2814_v41 = vpop.f32.mrb[40].mxu1  ;;  %2857 = vmatmul.mubr.msk.f32.gmra.mrb[32].mxu0 %vm535_vm0, %v3115_v28  ;;  %v4114_v22 = vpop.permute.xlu1 %1860 }
 0x296   : > { %3126 = vtanh.f32 %v1180_v10  ;;  %v1190_v47 = vadd.f32 %v2814_v41, %v4048_v12  ;;  %v1184_v48 = vpop.f32.mrb[41].mxu1  ;;  %v4116_v28 = vpop.permute.xlu0 %1855 }
 0x297   : > { %v3117_v57 = vpop.eup %3116  ;;  %v1185_v18 = vadd.f32 %v4048_v12, %v1184_v48 }
 0x298   : > { %v3119_v55 = vpop.eup %3118  ;;  %2859 = vmatprep.mubr.msk.f32.mxu0 %vm535_vm0, %v3117_v57 }
 0x299   : > { %3128 = vtanh.f32 %v1185_v18  ;;  %v2817_v24 = vpop.f32.mrb[42].mxu1  ;;  %2860 = vmatmul.mubr.msk.f32.gmra.mrb[34].mxu0 %vm535_vm0, %v3119_v55  ;;  %v4118_v41 = vpop.permute.xlu1 %1870 }
 0x29a   : > { %3130 = vtanh.f32 %v1190_v47  ;;  %v1200_v6 = vadd.f32 %v2817_v24, %v4048_v12  ;;  %v1194_v45 = vpop.f32.mrb[43].mxu1  ;;  %v4120_v47 = vpop.permute.xlu0 %1865 }
 0x29b   : > { %v3121_v58 = vpop.eup %3120  ;;  %v1195_v49 = vadd.f32 %v4048_v12, %v1194_v45 }
 0x29c   : > { %v3123_v37 = vpop.eup %3122  ;;  %2862 = vmatprep.mubr.msk.f32.mxu0 %vm535_vm0, %v3121_v58 }
 0x29d   : > { %3132 = vtanh.f32 %v1195_v49  ;;  %v2820_v14 = vpop.f32.mrb[44].mxu1  ;;  %2863 = vmatmul.mubr.msk.f32.gmra.mrb[36].mxu0 %vm535_vm0, %v3123_v37  ;;  %v4122_v48 = vpop.permute.xlu1 %1880 }
 0x29e   : > { %3134 = vtanh.f32 %v1200_v6  ;;  %v1210_v16 = vadd.f32 %v2820_v14, %v4048_v12  ;;  %v1204_v40 = vpop.f32.mrb[45].mxu1  ;;  %v4124_v57 = vpop.permute.xlu0 %1875 }
 0x29f   : > { %v3125_v61 = vpop.eup %3124  ;;  %v1205_v23 = vadd.f32 %v4048_v12, %v1204_v40 }
 0x2a0   : > { %v3127_v36 = vpop.eup %3126  ;;  %2865 = vmatprep.mubr.msk.f32.mxu0 %vm535_vm0, %v3125_v61 }
 0x2a1   : > { %3136 = vtanh.f32 %v1205_v23  ;;  %v2823_v27 = vpop.f32.mrb[46].mxu1  ;;  %2866 = vmatmul.mubr.msk.f32.gmra.mrb[38].mxu0 %vm535_vm0, %v3127_v36  ;;  %v4126_v18 = vpop.permute.xlu1 %1890 }
 0x2a2   : > { %3138 = vtanh.f32 %v1210_v16  ;;  %v1220_v52 = vadd.f32 %v2823_v27, %v4048_v12  ;;  %v1214_v60 = vpop.f32.mrb[47].mxu1  ;;  %v4128_v55 = vpop.permute.xlu0 %1885 }
 0x2a3   : > { %v3129_v34 = vpop.eup %3128  ;;  %v1215_v35 = vadd.f32 %v4048_v12, %v1214_v60 }
 0x2a4   : > { %v3131_v0 = vpop.eup %3130  ;;  %2868 = vmatprep.mubr.msk.f32.mxu0 %vm535_vm0, %v3129_v34 }
 0x2a5   : > { %3140 = vtanh.f32 %v1215_v35  ;;  %2869 = vmatmul.mubr.msk.f32.gmra.mrb[40].mxu0 %vm535_vm0, %v3131_v0  ;;  %v4130_v24 = vpop.permute.xlu1 %1900 }
 0x2a6   : > { %3142 = vtanh.f32 %v1220_v52  ;;  %v4132_v6 = vpop.permute.xlu0 %1895 }
 0x2a7   : > { %v3133_v19 = vpop.eup %3132 }
 0x2a8   : > { %v3135_v11 = vpop.eup %3134  ;;  %2871 = vmatprep.mubr.msk.f32.mxu0 %vm535_vm0, %v3133_v19 }
 0x2a9   : > { %2872 = vmatmul.mubr.msk.f32.gmra.mrb[42].mxu0 %vm535_vm0, %v3135_v11  ;;  %v4134_v45 = vpop.permute.xlu1 %1910 }
 0x2aa   : > { %4782 = vst [vmem:[#allocation20_spill] sm:$0xff] %v4134_v45  ;;  %v4136_v58 = vpop.permute.xlu0 %1905 }
 0x2ab   : > { %v3137_v10 = vpop.eup %3136  ;;  %4783 = vst [vmem:[#allocation21_spill] sm:$0xff] %v4136_v58 }
 0x2ac   : > { %v3139_v17 = vpop.eup %3138  ;;  %2874 = vmatprep.mubr.msk.f32.mxu0 %vm535_vm0, %v3137_v10 }
 0x2ad   : > { %2875 = vmatmul.mubr.msk.f32.gmra.mrb[44].mxu0 %vm535_vm0, %v3139_v17  ;;  %v4138_v49 = vpop.permute.xlu1 %1920 }
 0x2ae   : > { %4784 = vst [vmem:[#allocation22_spill] sm:$0xff] %v4138_v49  ;;  %v4140_v37 = vpop.permute.xlu0 %1915 }
 0x2af   : > { %v3141_v12 = vpop.eup %3140  ;;  %4785 = vst [vmem:[#allocation23_spill] sm:$0xff] %v4140_v37 }
 0x2b0   : > { %v3143_v21 = vpop.eup %3142  ;;  %2877 = vmatprep.mubr.msk.f32.mxu0 %vm535_vm0, %v3141_v12 }
 0x2b1   : > { %2878 = vmatmul.mubr.msk.f32.gmra.mrb[46].mxu0 %vm535_vm0, %v3143_v21  ;;  %v4142_v14 = vpop.permute.xlu1 %1930 }
 0x2b2   : > { %4786 = vst [vmem:[#allocation24_spill] sm:$0xff] %v4142_v14  ;;  %v4144_v16 = vpop.permute.xlu0 %1925 }
 0x2b3   : > { %4787 = vst [vmem:[#allocation25_spill] sm:$0xff] %v4144_v16 }
 0x2b5   : > { %v4146_v40 = vpop.permute.xlu1 %1940 }
 0x2b6   : > { %4788 = vst [vmem:[#allocation26_spill] sm:$0xff] %v4146_v40  ;;  %v4148_v61 = vpop.permute.xlu0 %1935 }
 0x2b7   : > { %4789 = vst [vmem:[#allocation27_spill] sm:$0xff] %v4148_v61 }
 0x2b9   : > { %v4150_v23 = vpop.permute.xlu1 %1950 }
 0x2ba   : > { %4790 = vst [vmem:[#allocation28_spill] sm:$0xff] %v4150_v23  ;;  %v4152_v36 = vpop.permute.xlu0 %1945 }
 0x2bb   : > { %4791 = vst [vmem:[#allocation29_spill] sm:$0xff] %v4152_v36 }
 0x2bd   : > { %v4154_v27 = vpop.permute.xlu1 %1960 }
 0x2be   : > { %4792 = vst [vmem:[#allocation30_spill] sm:$0xff] %v4154_v27  ;;  %v4156_v52 = vpop.permute.xlu0 %1955 }
 0x2bf   : > { %4793 = vst [vmem:[#allocation31_spill] sm:$0xff] %v4156_v52 }
 0x2c1   : > { %v4158_v60 = vpop.permute.xlu1 %1970 }
 0x2c2   : > { %4794 = vst [vmem:[#allocation32_spill] sm:$0xff] %v4158_v60  ;;  %v4160_v34 = vpop.permute.xlu0 %1965  ;;  %v4215_v60 = vld [vmem:[%s4705_s4 + $0x21] ss:$0 sm:$0xff] }
 0x2c3   : > { %4795 = vst [vmem:[#allocation33_spill] sm:$0xff] %v4160_v34 }
 0x2c5   : > { %v4162_v35 = vpop.permute.xlu1 %1980 }
 0x2c6   : > { %4796 = vst [vmem:[#allocation34_spill] sm:$0xff] %v4162_v35  ;;  %v4164_v0 = vpop.permute.xlu0 %1975 }
 0x2c7   : > { %4797 = vst [vmem:[#allocation35_spill] sm:$0xff] %v4164_v0 }
 0x2c9   : > { %v4166_v19 = vpop.permute.xlu1 %1990 }
 0x2ca   : > { %4798 = vst [vmem:[#allocation36_spill] sm:$0xff] %v4166_v19  ;;  %v4168_v11 = vpop.permute.xlu0 %1985 }
 0x2cb   : > { %4799 = vst [vmem:[#allocation37_spill] sm:$0xff] %v4168_v11 }
 0x2cd   : > { %v4170_v10 = vpop.permute.xlu1 %2000 }
 0x2ce   : > { %4800 = vst [vmem:[#allocation38_spill] sm:$0xff] %v4170_v10  ;;  %v4172_v17 = vpop.permute.xlu0 %1995 }
 0x2cf   : > { %4801 = vst [vmem:[#allocation39_spill] sm:$0xff] %v4172_v17  ;;  %v4193_v17 = vld [vmem:[%s4705_s4 + $0x22] ss:$0 sm:$0xff] }
 0x2d0   : > { %v1787_v10 = vmul.f32 %v4193_v17, %v3728_v42  ;;  %v1785_v8 = vmul.f32 %v4193_v17, %v3730_v38  ;;  %v1788_v50 = vmul.f32 %v4193_v17, %v3739_v31  ;;  %v1790_v51 = vmul.f32 %v4193_v17, %v3751_v44 }
 0x2d1   : > { %v4174_v12 = vpop.permute.xlu1 %2010  ;;  %v1789_v29 = vmul.f32 %v4193_v17, %v3753_v43  ;;  %v1794_v16 = vmul.f32 %v4193_v17, %v3775_v56 }
 0x2d2   : > { %4802 = vst [vmem:[#allocation40_spill] sm:$0xff] %v4174_v12  ;;  %v4176_v21 = vpop.permute.xlu0 %2005  ;;  %v4227_v53 = vadd.f32 %v4215_v60, %v1787_v10  ;;  %v1821_v10 = vadd.f32 %v4215_v60, %v1785_v8 }
 0x2d3   : > { %4803 = vst [vmem:[#allocation41_spill] sm:$0xff] %v4176_v21  ;;  %v4198_v21 = vld [vmem:[%s4705_s4 + $0x24] ss:$0 sm:$0xff]  ;;  %v4279_v37 = vadd.f32 %v4215_v60, %v1789_v29 }
 0x2d4   : > { %v2083_v35 = vmul.f32 %v4198_v21, %v3728_v42  ;;  %v2081_v34 = vmul.f32 %v4198_v21, %v3730_v38  ;;  %v2084_v52 = vmul.f32 %v4198_v21, %v3739_v31  ;;  %v4224_v42 = vld [vmem:[%s4705_s4 + $0x23] ss:$0 sm:$0xff]  ;;  %v1786_v38 = vmul.f32 %v4193_v17, %v3741_v54 }
 0x2d5   : > { %v4178_v30 = vpop.permute.xlu1 %2156  ;;  %v2082_v27 = vmul.f32 %v4198_v21, %v3741_v54  ;;  %v2086_v31 = vmul.f32 %v4198_v21, %v3751_v44  ;;  %v2085_v61 = vmul.f32 %v4198_v21, %v3753_v43  ;;  %v1824_v44 = vadd.f32 %v4215_v60, %v1788_v50 }
 0x2d6   : > { %v4180_v1 = vpop.permute.xlu0 %2151  ;;  %v4238_v36 = vadd.f32 %v4224_v42, %v2083_v35  ;;  %v2117_v54 = vadd.f32 %v4224_v42, %v2081_v34  ;;  %v1792_v35 = vmul.f32 %v4193_v17, %v3763_v39  ;;  %v2088_v40 = vmul.f32 %v4198_v21, %v3763_v39 }
 0x2d7   : > { %v2120_v8 = vadd.f32 %v4224_v42, %v2084_v52  ;;  %v1822_v43 = vadd.f32 %v4215_v60, %v1786_v38  ;;  %v1791_v34 = vmul.f32 %v4193_v17, %v3765_v46  ;;  %v2087_v50 = vmul.f32 %v4198_v21, %v3765_v46 }
 0x2d8   : > { %v4269_v39 = vadd.f32 %v4215_v60, %v1790_v51  ;;  %v2090_v52 = vmul.f32 %v4198_v21, %v3775_v56  ;;  %v2118_v14 = vadd.f32 %v4224_v42, %v2082_v27  ;;  %v4275_v62 = vadd.f32 %v4224_v42, %v2086_v31 }
 0x2d9   : > { %v4182_v2 = vpop.permute.xlu1 %2166  ;;  %v1793_v46 = vmul.f32 %v4193_v17, %v3777_v59  ;;  %v4284_v51 = vadd.f32 %v4224_v42, %v2085_v61  ;;  %v4288_v27 = vadd.f32 %v4215_v60, %v1792_v35  ;;  %v2089_v31 = vmul.f32 %v4198_v21, %v3777_v59 }
 0x2da   : > { %v4184_v20 = vpop.permute.xlu0 %2161  ;;  %v4293_v49 = vadd.f32 %v4224_v42, %v2088_v40  ;;  %v4299_v58 = vadd.f32 %v4215_v60, %v1791_v34  ;;  %v4302_v61 = vadd.f32 %v4215_v60, %v1794_v16  ;;  %v1796_v40 = vmul.f32 %v4193_v17, %v3788_v4 }
 0x2db   : > { %v4317_v34 = vadd.f32 %v4224_v42, %v2090_v52  ;;  %v2309_v26 = vmul.f32 %v4180_v1, %v2117_v54 }
 0x2dd   : > { %v4186_v0 = vpop.permute.xlu1 %2176 }
 0x2de   : > { %v4188_v19 = vpop.permute.xlu0 %2171 }
 0x2e1   : > { %v4200_v12 = vpop.permute.xlu1 %2186 }
 0x2e2   : > { %v4204_v11 = vpop.permute.xlu0 %2181 }
 0x2e5   : > { %v4240_v23 = vpop.permute.xlu1 %2196 }
 0x2e6   : > { %v4248_v25 = vpop.permute.xlu0 %2191 }
 0x2e7   : > { %4804 = vst [vmem:[#allocation42_spill] sm:$0xff] %v4248_v25  ;;  %v4327_v25 = vadd.f32 %v4224_v42, %v2089_v31 }
 0x2e9   : > { %v4295_v29 = vpop.permute.xlu1 %2206 }
 0x2ea   : > { %4805 = vst [vmem:[#allocation43_spill] sm:$0xff] %v4295_v29  ;;  %v4307_v35 = vpop.permute.xlu0 %2201 }
 0x2eb   : > { %4806 = vst [vmem:[#allocation44_spill] sm:$0xff] %v4307_v35  ;;  %v2310_v35 = vmul.f32 %v4178_v30, %v2118_v14  ;;  %v4336_v14 = vadd.f32 %v4215_v60, %v1796_v40 }
 0x2ed   : > { %v4341_v54 = vpop.permute.xlu1 %2216 }
 0x348   : > { %v2834_v38 = vpop.f32.mrb[16].mxu0 }
 0x349   : > { %v1432_v7 = vadd.f32 %v2834_v38, %v4259_v63  ;;  %v1426_v56 = vpop.f32.mrb[17].mxu0  ;;  %v4305_v38 = vadd.f32 %v4224_v42, %v2087_v50  ;;  %v4321_v50 = vadd.f32 %v4215_v60, %v1793_v46 }
 0x34a   : > { %v1427_v5 = vadd.f32 %v4259_v63, %v1426_v56  ;;  %v2092_v56 = vmul.f32 %v4198_v21, %v3788_v4 }
 0x34b   : > { %v2014_v59 = vmul.f32 %v4114_v22, %v1432_v7 }
 0x34c   : > { %v2013_v16 = vmul.f32 %v4116_v28, %v1427_v5  ;;  %v2837_v29 = vpop.f32.mrb[18].mxu0  ;;  %v1795_v5 = vmul.f32 %v4193_v17, %v3790_v9  ;;  %v2091_v28 = vmul.f32 %v4198_v21, %v3790_v9  ;;  %v4339_v1 = vadd.f32 %v4224_v42, %v2092_v56 }
 0x34d   : > { %v2046_v45 = vadd.f32 %v2014_v59, %v1822_v43  ;;  %v1442_v7 = vadd.f32 %v2837_v29, %v4259_v63  ;;  %v1436_v22 = vpop.f32.mrb[19].mxu0  ;;  %v1798_v29 = vmul.f32 %v4193_v17, %v3802_v13  ;;  %v2312_v9 = vmul.f32 %v4182_v2, %v2120_v8 }
 0x34e   : > { %v2045_v4 = vadd.f32 %v2013_v16, %v1821_v10  ;;  %v1437_v52 = vadd.f32 %v4259_v63, %v1436_v22  ;;  %v4361_v40 = vadd.f32 %v4215_v60, %v1795_v5 }
 0x34f   : > { %v2342_v46 = vadd.f32 %v2310_v35, %v2046_v45  ;;  %v2016_v30 = vmul.f32 %v4118_v41, %v1442_v7  ;;  %v4347_v45 = vpop.permute.xlu0 %2211  ;;  %v4373_v22 = vadd.f32 %v4215_v60, %v1798_v29 }
 0x350   : > { %v2341_v10 = vadd.f32 %v2309_v26, %v2045_v4  ;;  %v2015_v43 = vmul.f32 %v4120_v47, %v1437_v52  ;;  %v2840_v31 = vpop.f32.mrb[20].mxu0  ;;  %v2094_v26 = vmul.f32 %v4198_v21, %v3802_v13  ;;  %v2311_v47 = vmul.f32 %v4184_v20, %v4238_v36 }
 0x351   : > { %2374 = vst [vmem:[%s4349_s6 + $0x8] sm:$0xff] %v2342_v46  ;;  %v2048_v41 = vadd.f32 %v2016_v30, %v1824_v44  ;;  %v1452_v35 = vadd.f32 %v2840_v31, %v4259_v63  ;;  %v1446_v59 = vpop.f32.mrb[21].mxu0  ;;  %v4364_v44 = vadd.f32 %v4224_v42, %v2091_v28  ;;  %v1797_v13 = vmul.f32 %v4193_v17, %v3804_v15 }
 0x352   : > { %2373 = vst [vmem:[%s4349_s6] sm:$0xff] %v2341_v10  ;;  %v2047_v2 = vadd.f32 %v2015_v43, %v4227_v53  ;;  %v1447_v8 = vadd.f32 %v4259_v63, %v1446_v59  ;;  %v2093_v20 = vmul.f32 %v4198_v21, %v3804_v15  ;;  %v2314_v4 = vmul.f32 %v4186_v0, %v4275_v62 }
 0x353   : > { %v2344_v56 = vadd.f32 %v2312_v9, %v2048_v41  ;;  %v2018_v16 = vmul.f32 %v4122_v48, %v1452_v35  ;;  %v2313_v28 = vmul.f32 %v4188_v19, %v4284_v51  ;;  %v4383_v15 = vadd.f32 %v4224_v42, %v2094_v26  ;;  %v4394_v30 = vpop.permute.xlu0 %2221 }
 0x354   : > { %v2343_v36 = vadd.f32 %v2311_v47, %v2047_v2  ;;  %v2017_v53 = vmul.f32 %v4124_v57, %v1447_v8  ;;  %v2843_v7 = vpop.f32.mrb[22].mxu0  ;;  %v4385_v57 = vpop.permute.xlu1 %2226  ;;  %v1800_v0 = vmul.f32 %v4193_v17, %v3816_v32  ;;  %v4398_v10 = vadd.f32 %v4215_v60, %v1797_v13 }
 0x355   : > { %2376 = vst [vmem:[%s4349_s6 + $0x18] sm:$0xff] %v2344_v56  ;;  %v2050_v52 = vadd.f32 %v2018_v16, %v4269_v39  ;;  %v1462_v48 = vadd.f32 %v2843_v7, %v4259_v63  ;;  %v1456_v5 = vpop.f32.mrb[23].mxu0  ;;  %v2096_v39 = vmul.f32 %v4198_v21, %v3816_v32  ;;  %v4401_v43 = vadd.f32 %v4224_v42, %v2093_v20 }
 0x356   : > { %2375 = vst [vmem:[%s4349_s6 + $0x10] sm:$0xff] %v2343_v36  ;;  %v2049_v46 = vadd.f32 %v2017_v53, %v4279_v37  ;;  %v1457_v62 = vadd.f32 %v4259_v63, %v1456_v5  ;;  %v1799_v9 = vmul.f32 %v4193_v17, %v3818_v33  ;;  %v2316_v32 = vmul.f32 %v4200_v12, %v4293_v49  ;;  %v4807_v53 = vld [vmem:[#allocation42_spill] sm:$0xff]  ;;  %v4809_v5 = vld [vmem:[#allocation20_spill] sm:$0xff] }
 0x357   : > { %v2346_v19 = vadd.f32 %v2314_v4, %v2050_v52  ;;  %v2020_v51 = vmul.f32 %v4126_v18, %v1462_v48  ;;  %v2095_v59 = vmul.f32 %v4198_v21, %v3818_v33  ;;  %v2315_v26 = vmul.f32 %v4204_v11, %v4305_v38 }
 0x358   : > { %v2345_v37 = vadd.f32 %v2313_v28, %v2049_v46  ;;  %v2019_v31 = vmul.f32 %v4128_v55, %v1457_v62  ;;  %v2846_v29 = vpop.f32.mrb[24].mxu0  ;;  %v4419_v49 = vadd.f32 %v4215_v60, %v1800_v0  ;;  %v4422_v12 = vadd.f32 %v4224_v42, %v2096_v39  ;;  %v4429_v38 = vpop.permute.xlu1 %2236 }
 0x359   : > { %2378 = vst [vmem:[%s4349_s6 + $0x28] sm:$0xff] %v2346_v19  ;;  %v2052_v41 = vadd.f32 %v2020_v51, %v4288_v27  ;;  %v1472_v18 = vadd.f32 %v2846_v29, %v4259_v63  ;;  %v1466_v35 = vpop.f32.mrb[25].mxu0  ;;  %v1802_v33 = vmul.f32 %v4193_v17, %v3831_v3  ;;  %v2098_v11 = vmul.f32 %v4198_v21, %v3831_v3  ;;  %v4811_v19 = vld [vmem:[#allocation6_spill] sm:$0xff] }
 0x35a   : > { %2377 = vst [vmem:[%s4349_s6 + $0x20] sm:$0xff] %v2345_v37  ;;  %v2051_v55 = vadd.f32 %v2019_v31, %v4299_v58  ;;  %v1467_v47 = vadd.f32 %v4259_v63, %v1466_v35  ;;  %v4433_v16 = vadd.f32 %v4215_v60, %v1799_v9  ;;  %v2318_v13 = vmul.f32 %v4240_v23, %v4317_v34  ;;  %v4808_v34 = vld [vmem:[#allocation5_spill] sm:$0xff]  ;;  %v4812_v37 = vld [vmem:[#allocation43_spill] sm:$0xff] }
 0x35b   : > { %v2348_v27 = vadd.f32 %v2316_v32, %v2052_v41  ;;  %v2022_v2 = vmul.f32 %v4130_v24, %v1472_v18  ;;  %v4437_v24 = vpop.permute.xlu0 %2231  ;;  %v2317_v7 = vmul.f32 %v4807_v53, %v4327_v25  ;;  %v1801_v52 = vmul.f32 %v4193_v17, %v4808_v34  ;;  %v4813_v18 = vld [vmem:[#allocation44_spill] sm:$0xff] }
 0x35c   : > { %v2347_v58 = vadd.f32 %v2315_v26, %v2051_v55  ;;  %v2021_v8 = vmul.f32 %v4132_v6, %v1467_v47  ;;  %v2849_v56 = vpop.f32.mrb[26].mxu0  ;;  %v4445_v6 = vadd.f32 %v4224_v42, %v2095_v59  ;;  %v4456_v25 = vadd.f32 %v4215_v60, %v1802_v33  ;;  %v4473_v59 = vpop.permute.xlu1 %2246 }
 0x35d   : > { %2380 = vst [vmem:[%s4349_s6 + $0x38] sm:$0xff] %v2348_v27  ;;  %v2054_v20 = vadd.f32 %v2022_v2, %v4302_v61  ;;  %v1482_v36 = vadd.f32 %v2849_v56, %v4259_v63  ;;  %v1476_v3 = vpop.f32.mrb[27].mxu0  ;;  %v2097_v61 = vmul.f32 %v4198_v21, %v4808_v34  ;;  %v4459_v46 = vadd.f32 %v4224_v42, %v2098_v11  ;;  %v4814_v2 = vld [vmem:[#allocation22_spill] sm:$0xff]  ;;  %v4815_v11 = vld [vmem:[#allocation7_spill] sm:$0xff] }
 0x35e   : > { %2379 = vst [vmem:[%s4349_s6 + $0x30] sm:$0xff] %v2347_v58  ;;  %v2053_v4 = vadd.f32 %v2021_v8, %v4321_v50  ;;  %v1477_v23 = vadd.f32 %v4259_v63, %v1476_v3  ;;  %v4810_v50 = vld [vmem:[#allocation21_spill] sm:$0xff]  ;;  %v1804_v51 = vmul.f32 %v4193_v17, %v4811_v19  ;;  %v2320_v31 = vmul.f32 %v4812_v37, %v4339_v1 }
 0x35f   : > { %v2350_v48 = vadd.f32 %v2318_v13, %v2054_v20  ;;  %v2024_v28 = vmul.f32 %v4809_v5, %v1482_v36  ;;  %v2100_v41 = vmul.f32 %v4198_v21, %v4811_v19  ;;  %v2319_v35 = vmul.f32 %v4813_v18, %v4364_v44  ;;  %v4480_v47 = vpop.permute.xlu0 %2241 }
 0x360   : > { %v2349_v62 = vadd.f32 %v2317_v7, %v2053_v4  ;;  %v2023_v0 = vmul.f32 %v4810_v50, %v1477_v23  ;;  %v2852_v39 = vpop.f32.mrb[28].mxu0  ;;  %v1837_v55 = vadd.f32 %v4215_v60, %v1801_v52  ;;  %v1803_v44 = vmul.f32 %v4193_v17, %v4815_v11 }
 0x361   : > { %2382 = vst [vmem:[%s4349_s6 + $0x48] sm:$0xff] %v2350_v48  ;;  %v2056_v29 = vadd.f32 %v2024_v28, %v4336_v14  ;;  %v1492_v9 = vadd.f32 %v2852_v39, %v4259_v63  ;;  %v1486_v32 = vpop.f32.mrb[29].mxu0  ;;  %v2133_v14 = vadd.f32 %v4224_v42, %v2097_v61  ;;  %v2099_v58 = vmul.f32 %v4198_v21, %v4815_v11  ;;  %v4817_v61 = vld [vmem:[#allocation8_spill] sm:$0xff]  ;;  %v4509_v28 = vpop.permute.xlu1 %2256  ;;  %v4820_v39 = vld [vmem:[#allocation9_spill] sm:$0xff] }
 0x362   : > { %2381 = vst [vmem:[%s4349_s6 + $0x40] sm:$0xff] %v2349_v62  ;;  %v2055_v26 = vadd.f32 %v2023_v0, %v4361_v40  ;;  %v1487_v1 = vadd.f32 %v4259_v63, %v1486_v32  ;;  %v4816_v40 = vld [vmem:[#allocation23_spill] sm:$0xff]  ;;  %v4489_v20 = vadd.f32 %v4215_v60, %v1804_v51  ;;  %v2322_v36 = vmul.f32 %v4341_v54, %v4383_v15  ;;  %v4818_v48 = vld [vmem:[#allocation24_spill] sm:$0xff] }
 0x363   : > { %v2352_v27 = vadd.f32 %v2320_v31, %v2056_v29  ;;  %v2026_v33 = vmul.f32 %v4814_v2, %v1492_v9  ;;  %v2321_v4 = vmul.f32 %v4347_v45, %v4401_v43  ;;  %v2136_v23 = vadd.f32 %v4224_v42, %v2100_v41  ;;  %v4516_v37 = vpop.permute.xlu0 %2251 }
 0x364   : > { %v2351_v8 = vadd.f32 %v2319_v35, %v2055_v26  ;;  %v2025_v56 = vmul.f32 %v4816_v40, %v1487_v1  ;;  %v2855_v13 = vpop.f32.mrb[30].mxu0  ;;  %v1806_v54 = vmul.f32 %v4193_v17, %v4817_v61  ;;  %v1839_v45 = vadd.f32 %v4215_v60, %v1803_v44  ;;  %v4821_v26 = vld [vmem:[#allocation26_spill] sm:$0xff] }
 0x365   : > { %2384 = vst [vmem:[%s4349_s6 + $0x58] sm:$0xff] %v2352_v27  ;;  %v2058_v3 = vadd.f32 %v2026_v33, %v4373_v22  ;;  %v1502_v53 = vadd.f32 %v2855_v13, %v4259_v63  ;;  %v1496_v7 = vpop.f32.mrb[31].mxu0  ;;  %v2102_v22 = vmul.f32 %v4198_v21, %v4817_v61  ;;  %v2135_v43 = vadd.f32 %v4224_v42, %v2099_v58  ;;  %v4822_v27 = vld [vmem:[#allocation10_spill] sm:$0xff] }
 0x366   : > { %2383 = vst [vmem:[%s4349_s6 + $0x50] sm:$0xff] %v2351_v8  ;;  %v2057_v34 = vadd.f32 %v2025_v56, %v4398_v10  ;;  %v1497_v52 = vadd.f32 %v4259_v63, %v1496_v7  ;;  %v4819_v10 = vld [vmem:[#allocation25_spill] sm:$0xff]  ;;  %v1805_v19 = vmul.f32 %v4193_v17, %v4820_v39  ;;  %v2324_v51 = vmul.f32 %v4385_v57, %v4422_v12 }
 0x367   : > { %v2354_v15 = vadd.f32 %v2322_v36, %v2058_v3  ;;  %v2028_v5 = vmul.f32 %v4818_v48, %v1502_v53  ;;  %v2101_v32 = vmul.f32 %v4198_v21, %v4820_v39  ;;  %v2323_v41 = vmul.f32 %v4394_v30, %v4445_v6  ;;  %v4823_v6 = vld [vmem:[#allocation27_spill] sm:$0xff]  ;;  %v2267_v3 = vpop.permute.xlu1 %2266  ;;  %v4827_v48 = vld [vmem:[#allocation12_spill] sm:$0xff] }
 0x368   : > { %v2353_v62 = vadd.f32 %v2321_v4, %v2057_v34  ;;  %v2027_v50 = vmul.f32 %v4819_v10, %v1497_v52  ;;  %v2858_v0 = vpop.f32.mrb[32].mxu0  ;;  %v1842_v12 = vadd.f32 %v4215_v60, %v1806_v54  ;;  %v2138_v35 = vadd.f32 %v4224_v42, %v2102_v22  ;;  %v4824_v4 = vld [vmem:[#allocation11_spill] sm:$0xff]  ;;  %v4825_v52 = vld [vmem:[#allocation28_spill] sm:$0xff]  ;;  %v4826_v22 = vld [vmem:[#allocation29_spill] sm:$0xff] }
 0x369   : > { %2386 = vst [vmem:[%s4349_s6 + $0x68] sm:$0xff] %v2354_v15  ;;  %v2060_v31 = vadd.f32 %v2028_v5, %v4419_v49  ;;  %v1512_v29 = vadd.f32 %v2858_v0, %v4259_v63  ;;  %v1506_v9 = vpop.f32.mrb[33].mxu0  ;;  %v1808_v2 = vmul.f32 %v4193_v17, %v4822_v27  ;;  %v2104_v33 = vmul.f32 %v4198_v21, %v4822_v27 }
 0x36a   : > { %2385 = vst [vmem:[%s4349_s6 + $0x60] sm:$0xff] %v2353_v62  ;;  %v2059_v18 = vadd.f32 %v2027_v50, %v4433_v16  ;;  %v1507_v57 = vadd.f32 %v4259_v63, %v1506_v9  ;;  %v1841_v44 = vadd.f32 %v4215_v60, %v1805_v19  ;;  %v2326_v58 = vmul.f32 %v4429_v38, %v4459_v46  ;;  %v4828_v9 = vld [vmem:[#allocation30_spill] sm:$0xff] }
 0x36b   : > { %v2356_v49 = vadd.f32 %v2324_v51, %v2060_v31  ;;  %v2030_v1 = vmul.f32 %v4821_v26, %v1512_v29  ;;  %v2325_v13 = vmul.f32 %v4437_v24, %v2133_v14  ;;  %v2137_v36 = vadd.f32 %v4224_v42, %v2101_v32  ;;  %v4829_v32 = vld [vmem:[#allocation13_spill] sm:$0xff] }
 0x36c   : > { %v2355_v30 = vadd.f32 %v2323_v41, %v2059_v18  ;;  %v2029_v11 = vmul.f32 %v4823_v6, %v1507_v57  ;;  %v2861_v16 = vpop.f32.mrb[34].mxu0  ;;  %v1807_v34 = vmul.f32 %v4193_v17, %v4824_v4  ;;  %v2103_v38 = vmul.f32 %v4198_v21, %v4824_v4  ;;  %v4830_v57 = vld [vmem:[#allocation31_spill] sm:$0xff] }
 0x36d   : > { %2388 = vst [vmem:[%s4349_s6 + $0x78] sm:$0xff] %v2356_v49  ;;  %v2062_v8 = vadd.f32 %v2030_v1, %v4456_v25  ;;  %v1522_v40 = vadd.f32 %v2861_v16, %v4259_v63  ;;  %v1516_v56 = vpop.f32.mrb[35].mxu0  ;;  %v2262_v25 = vpop.permute.xlu0 %2261  ;;  %v1844_v24 = vadd.f32 %v4215_v60, %v1808_v2  ;;  %v2140_v14 = vadd.f32 %v4224_v42, %v2104_v33  ;;  %v4834_v4 = vld [vmem:[#allocation15_spill] sm:$0xff] }
 0x36e   : > { %2387 = vst [vmem:[%s4349_s6 + $0x70] sm:$0xff] %v2355_v30  ;;  %v2061_v53 = vadd.f32 %v2029_v11, %v1837_v55  ;;  %v1517_v7 = vadd.f32 %v4259_v63, %v1516_v56  ;;  %v1810_v5 = vmul.f32 %v4193_v17, %v4827_v48  ;;  %v2328_v62 = vmul.f32 %v4473_v59, %v2136_v23 }
 0x36f   : > { %v2358_v46 = vadd.f32 %v2326_v58, %v2062_v8  ;;  %v2032_v61 = vmul.f32 %v4825_v52, %v1522_v40  ;;  %v2106_v39 = vmul.f32 %v4198_v21, %v4827_v48  ;;  %v2327_v19 = vmul.f32 %v4480_v47, %v2135_v43  ;;  %v2277_v47 = vpop.permute.xlu1 %2276  ;;  %v4831_v8 = vld [vmem:[#allocation14_spill] sm:$0xff] }
 0x370   : > { %v2357_v54 = vadd.f32 %v2325_v13, %v2061_v53  ;;  %v2031_v55 = vmul.f32 %v4826_v22, %v1517_v7  ;;  %v2864_v15 = vpop.f32.mrb[36].mxu0  ;;  %v1843_v29 = vadd.f32 %v4215_v60, %v1807_v34  ;;  %v2139_v59 = vadd.f32 %v4224_v42, %v2103_v38  ;;  %v4833_v53 = vld [vmem:[#allocation33_spill] sm:$0xff] }
 0x371   : > { %2390 = vst [vmem:[%s4349_s6 + $0x88] sm:$0xff] %v2358_v46  ;;  %v2064_v10 = vadd.f32 %v2032_v61, %v4489_v20  ;;  %v1532_v50 = vadd.f32 %v2864_v15, %v4259_v63  ;;  %v1526_v0 = vpop.f32.mrb[37].mxu0  ;;  %v1809_v41 = vmul.f32 %v4193_v17, %v4829_v32  ;;  %v2105_v18 = vmul.f32 %v4198_v21, %v4829_v32  ;;  %v2272_v27 = vpop.permute.xlu0 %2271 }
 0x372   : > { %2389 = vst [vmem:[%s4349_s6 + $0x80] sm:$0xff] %v2357_v54  ;;  %v2063_v51 = vadd.f32 %v2031_v55, %v1839_v45  ;;  %v1527_v31 = vadd.f32 %v4259_v63, %v1526_v0  ;;  %v1846_v26 = vadd.f32 %v4215_v60, %v1810_v5  ;;  %v2330_v1 = vmul.f32 %v4509_v28, %v2138_v35 }
 0x373   : > { %v2360_v23 = vadd.f32 %v2328_v62, %v2064_v10  ;;  %v2034_v20 = vmul.f32 %v4828_v9, %v1532_v50  ;;  %v2329_v6 = vmul.f32 %v4516_v37, %v2137_v36  ;;  %v2142_v11 = vadd.f32 %v4224_v42, %v2106_v39  ;;  %v2287_v55 = vpop.permute.xlu1 %2286  ;;  %v4836_v50 = vld [vmem:[#allocation16_spill] sm:$0xff] }
 0x374   : > { %v2359_v43 = vadd.f32 %v2327_v19, %v2063_v51  ;;  %v2033_v45 = vmul.f32 %v4830_v57, %v1527_v31  ;;  %v2867_v49 = vpop.f32.mrb[38].mxu0  ;;  %v1812_v40 = vmul.f32 %v4193_v17, %v4831_v8  ;;  %v2108_v28 = vmul.f32 %v4198_v21, %v4831_v8  ;;  %v4837_v19 = vld [vmem:[#allocation35_spill] sm:$0xff] }
 0x375   : > { %2392 = vst [vmem:[%s4349_s6 + $0x98] sm:$0xff] %v2360_v23  ;;  %v2066_v2 = vadd.f32 %v2034_v20, %v1842_v12  ;;  %v1542_v33 = vadd.f32 %v2867_v49, %v4259_v63  ;;  %v1536_v30 = vpop.f32.mrb[39].mxu0  ;;  %v4832_v12 = vld [vmem:[#allocation32_spill] sm:$0xff]  ;;  %v1845_v13 = vadd.f32 %v4215_v60, %v1809_v41  ;;  %v2141_v37 = vadd.f32 %v4224_v42, %v2105_v18 }
 0x376   : > { %2391 = vst [vmem:[%s4349_s6 + $0x90] sm:$0xff] %v2359_v43  ;;  %v2065_v16 = vadd.f32 %v2033_v45, %v1841_v44  ;;  %v1537_v58 = vadd.f32 %v4259_v63, %v1536_v30  ;;  %v1811_v34 = vmul.f32 %v4193_v17, %v4834_v4  ;;  %v2332_v38 = vmul.f32 %v2267_v3, %v2140_v14  ;;  %v2282_v3 = vpop.permute.xlu0 %2281  ;;  %v4835_v14 = vld [vmem:[#allocation34_spill] sm:$0xff] }
 0x377   : > { %v2362_v35 = vadd.f32 %v2330_v1, %v2066_v2  ;;  %v2036_v56 = vmul.f32 %v4832_v12, %v1542_v33  ;;  %v2107_v54 = vmul.f32 %v4198_v21, %v4834_v4  ;;  %v2331_v22 = vmul.f32 %v2262_v25, %v2139_v59  ;;  %v2297_v30 = vpop.permute.xlu1 %2296 }
 0x378   : > { %v2361_v36 = vadd.f32 %v2329_v6, %v2065_v16  ;;  %v2035_v7 = vmul.f32 %v4833_v53, %v1537_v58  ;;  %v2870_v44 = vpop.f32.mrb[40].mxu0  ;;  %v1848_v5 = vadd.f32 %v4215_v60, %v1812_v40  ;;  %v2144_v62 = vadd.f32 %v4224_v42, %v2108_v28  ;;  %v4841_v53 = vld [vmem:[#allocation18_spill] sm:$0xff] }
 0x379   : > { %2394 = vst [vmem:[%s4349_s6 + $0xa8] sm:$0xff] %v2362_v35  ;;  %v2068_v46 = vadd.f32 %v2036_v56, %v1844_v24  ;;  %v1552_v52 = vadd.f32 %v2870_v44, %v4259_v63  ;;  %v1546_v61 = vpop.f32.mrb[41].mxu0  ;;  %v1814_v0 = vmul.f32 %v4193_v17, %v4836_v50  ;;  %v2110_v25 = vmul.f32 %v4198_v21, %v4836_v50 }
 0x37a   : > { %2393 = vst [vmem:[%s4349_s6 + $0xa0] sm:$0xff] %v2361_v36  ;;  %v2067_v15 = vadd.f32 %v2035_v7, %v1843_v29  ;;  %v1547_v48 = vadd.f32 %v4259_v63, %v1546_v61  ;;  %v4838_v29 = vld [vmem:[#allocation17_spill] sm:$0xff]  ;;  %v2334_v23 = vmul.f32 %v2277_v47, %v2142_v11  ;;  %v2333_v18 = vmul.f32 %v2272_v27, %v2141_v37  ;;  %v4839_v47 = vld [vmem:[#allocation36_spill] sm:$0xff]  ;;  %v2292_v40 = vpop.permute.xlu0 %2291 }
 0x37b   : > { %v2364_v24 = vadd.f32 %v2332_v38, %v2068_v46  ;;  %v2038_v10 = vmul.f32 %v4835_v14, %v1552_v52  ;;  %v1813_v59 = vmul.f32 %v4193_v17, %v4838_v29  ;;  %v2109_v41 = vmul.f32 %v4198_v21, %v4838_v29  ;;  %v4840_v27 = vld [vmem:[#allocation37_spill] sm:$0xff]  ;;  %v4843_v46 = vld [vmem:[#allocation19_spill] sm:$0xff]  ;;  %v2307_v14 = vpop.permute.xlu1 %2306 }
 0x37c   : > { %v2363_v39 = vadd.f32 %v2331_v22, %v2067_v15  ;;  %v2037_v51 = vmul.f32 %v4837_v19, %v1547_v48  ;;  %v2873_v31 = vpop.f32.mrb[42].mxu0  ;;  %v1847_v45 = vadd.f32 %v4215_v60, %v1811_v34  ;;  %v2143_v49 = vadd.f32 %v4224_v42, %v2107_v54  ;;  %v4842_v34 = vld [vmem:[#allocation38_spill] sm:$0xff]  ;;  %v4844_v22 = vld [vmem:[#allocation39_spill] sm:$0xff] }
 0x37d   : > { %2396 = vst [vmem:[%s4349_s6 + $0xb8] sm:$0xff] %v2364_v24  ;;  %v2070_v9 = vadd.f32 %v2038_v10, %v1846_v26  ;;  %v1562_v20 = vadd.f32 %v2873_v31, %v4259_v63  ;;  %v1556_v32 = vpop.f32.mrb[43].mxu0  ;;  %v1850_v26 = vadd.f32 %v4215_v60, %v1814_v0  ;;  %v2146_v33 = vadd.f32 %v4224_v42, %v2110_v25 }
 0x37e   : > { %2395 = vst [vmem:[%s4349_s6 + $0xb0] sm:$0xff] %v2363_v39  ;;  %v2069_v43 = vadd.f32 %v2037_v51, %v1845_v13  ;;  %v1557_v57 = vadd.f32 %v4259_v63, %v1556_v32  ;;  %v1849_v58 = vadd.f32 %v4215_v60, %v1813_v59  ;;  %v2336_v8 = vmul.f32 %v2287_v55, %v2144_v62  ;;  %v2302_v0 = vpop.permute.xlu0 %2301  ;;  %v4845_v39 = vld [vmem:[#allocation40_spill] sm:$0xff]  ;;  %v4846_v59 = vld [vmem:[#allocation41_spill] sm:$0xff] }
 0x37f   : > { %v2366_v1 = vadd.f32 %v2334_v23, %v2070_v9  ;;  %v2040_v2 = vmul.f32 %v4839_v47, %v1562_v20  ;;  %v2335_v56 = vmul.f32 %v2282_v3, %v2143_v49  ;;  %v2145_v13 = vadd.f32 %v4224_v42, %v2109_v41 }
 0x380   : > { %v2365_v6 = vadd.f32 %v2333_v18, %v2069_v43  ;;  %v2039_v11 = vmul.f32 %v4840_v27, %v1557_v57  ;;  %v2876_v16 = vpop.f32.mrb[44].mxu0  ;;  %v1816_v7 = vmul.f32 %v4193_v17, %v4841_v53  ;;  %v2112_v44 = vmul.f32 %v4198_v21, %v4841_v53 }
 0x381   : > { %2398 = vst [vmem:[%s4349_s6 + $0xc8] sm:$0xff] %v2366_v1  ;;  %v2072_v28 = vadd.f32 %v2040_v2, %v1848_v5  ;;  %v1572_v35 = vadd.f32 %v2876_v16, %v4259_v63  ;;  %v1566_v12 = vpop.f32.mrb[45].mxu0  ;;  %v1815_v52 = vmul.f32 %v4193_v17, %v4843_v46  ;;  %v2111_v61 = vmul.f32 %v4198_v21, %v4843_v46 }
 0x382   : > { %2397 = vst [vmem:[%s4349_s6 + $0xc0] sm:$0xff] %v2365_v6  ;;  %v2071_v37 = vadd.f32 %v2039_v11, %v1847_v45  ;;  %v1567_v36 = vadd.f32 %v4259_v63, %v1566_v12  ;;  %v2338_v48 = vmul.f32 %v2297_v30, %v2146_v33  ;;  %v2337_v24 = vmul.f32 %v2292_v40, %v2145_v13 }
 0x383   : > { %v2368_v4 = vadd.f32 %v2336_v8, %v2072_v28  ;;  %v2042_v38 = vmul.f32 %v4842_v34, %v1572_v35  ;;  %v1852_v21 = vadd.f32 %v4215_v60, %v1816_v7  ;;  %v2148_v50 = vadd.f32 %v4224_v42, %v2112_v44 }
 0x384   : > { %v2367_v54 = vadd.f32 %v2335_v56, %v2071_v37  ;;  %v2041_v55 = vmul.f32 %v4844_v22, %v1567_v36  ;;  %v2879_v15 = vpop.f32.mrb[46].mxu0  ;;  %v1851_v51 = vadd.f32 %v4215_v60, %v1815_v52  ;;  %v2147_v31 = vadd.f32 %v4224_v42, %v2111_v61 }
 0x385   : > { %2400 = vst [vmem:[%s4349_s6 + $0xd8] sm:$0xff] %v2368_v4  ;;  %v2074_v5 = vadd.f32 %v2042_v38, %v1850_v26  ;;  %v1582_v62 = vadd.f32 %v2879_v15, %v4259_v63  ;;  %v1576_v3 = vpop.f32.mrb[47].mxu0 }
 0x386   : > { %2399 = vst [vmem:[%s4349_s6 + $0xd0] sm:$0xff] %v2367_v54  ;;  %v2073_v17 = vadd.f32 %v2041_v55, %v1849_v58  ;;  %v1577_v10 = vadd.f32 %v4259_v63, %v1576_v3  ;;  %v2340_v63 = vmul.f32 %v2307_v14, %v2148_v50  ;;  %v2339_v20 = vmul.f32 %v2302_v0, %v2147_v31 }
 0x387   : > { %v2370_v25 = vadd.f32 %v2338_v48, %v2074_v5  ;;  %v2044_v19 = vmul.f32 %v4845_v39, %v1582_v62 }
 0x388   : > { %v2369_v29 = vadd.f32 %v2337_v24, %v2073_v17  ;;  %v2043_v23 = vmul.f32 %v4846_v59, %v1577_v10 }
 0x389   : > { %2402 = vst [vmem:[%s4349_s6 + $0xe8] sm:$0xff] %v2370_v25  ;;  %v2076_v9 = vadd.f32 %v2044_v19, %v1852_v21 }
 0x38a   : > { %2401 = vst [vmem:[%s4349_s6 + $0xe0] sm:$0xff] %v2369_v29  ;;  %v2075_v32 = vadd.f32 %v2043_v23, %v1851_v51 }
 0x38b   : > { %v2372_v41 = vadd.f32 %v2340_v63, %v2076_v9 }
 0x38c   : > { %v2371_v60 = vadd.f32 %v2339_v20, %v2075_v32 }
 0x38d   : > { %2404 = vst [vmem:[%s4349_s6 + $0xf8] sm:$0xff] %v2372_v41 }
 0x38e   : > { %2403 = vst [vmem:[%s4349_s6 + $0xf0] sm:$0xff] %v2371_v60 }
 0x38f   : > { %3157 = shalt.err (!%p3154_p3)
}
 0x390   : > { %s3158_s16 = scalar_lea.hbm %s4652_s11, 4096  ;;  %s3162_s25 = scalar_lea.hbm %s4706_s5, 8192 }
 0x391   : > { %p3159_p4 = scmp.ne.s32.totalorder %s4652_s11, %s3158_s16  ;;  %p3163_p9 = scmp.lt.u32.totalorder %s4652_s11, %s4706_s5 }
 0x392   : > { %p3164_p10 = scmp.lt.u32.totalorder %s3162_s25, %s3158_s16  ;;  %p3166_p12 = scmp.lt.u32.totalorder %s3158_s16, %s4652_s11 }
 0x393   : > { %p3160_p7 = pnand %p3159_p4, %p3280_p5 }
 0x394   : > { %p3165_p11 = por %p3164_p10, %p3163_p9 }
 0x395   : > { %p3161_p8 = pneg %p3160_p7 }
 0x396   : > { %p3167_p13 = por %p3166_p12, %p3165_p11 }
 0x398   : > { %p3168_p0 = pnand %p3167_p13, %p3161_p8 }
 0x39a   : > { %3171 = shalt.err (!%p3168_p0)
}
 0x39b   : > { %s3210_s6 = smov 128   ;;  %s3211_s7 = smov 8  }
 0x39c   : > { %2908 = dma.vmem_to_hbm [thread:$0]  (%p3280_p5), %s4654_s8, 4096, %s4652_s11, %s4660_s22, %s3210_s6, %s3210_s6, %s3211_s7  }
 0x39d PF: > { %p2914_p1 = scmp.ge.s32.totalorder %s3206_s21, 2  ;;  %s2434_s9 = sand.u32 1, %s3194_s18  }
 0x39e   : > { %s2435_s10 = scalar_lea.sflag [#allocation3], %s2434_s9 }
 0x39f   : > { %p2911_p2 = pnand %p2914_p1, %p3284_p6 }
 0x3a1   : > { %3189 = dma.done.wait (!%p2911_p2), %s2435_s10, 4096  }
 0x3a2   : > { %3191 = vsyncadd (!%p2911_p2), %s2435_s10, 4294963200  ;;  %p15_p3 = scmp.ge.s32.totalorder %s3267_s24, 4   ;;  %s4847_s18 = smov %s3198_s19 }
 0x3a3   : > { %s4848_s19 = smov %s3202_s20  ;;  %s4849_s20 = smov %s3278_s27 }
 0x3a4   : > { %s4850_s21 = smov %s3267_s24  ;;  %17 = sbr.rel (!%p15_p3) target bundleno = 3 (0x3), region = 77 }
 0x3ab   :  { %2440 = vsyncpa [#allocation3], 1 }
 0x3ac   :  { %2442 = vsyncpa [#allocation3 + $0x1], 1 }

</bundles_post_ra>
